<compile_context>
chip_gen: v5e
topology: v5e:2x2
jax: 0.10.0
libtpu: 0.0.40
codegen_flags: <defaults>
</compile_context>

<pallas_src>
import jax
import jax.numpy as jnp
from jax.experimental import pallas as pl
from jax.experimental.pallas import tpu as pltpu
from functools import partial

_HI = jax.lax.Precision.HIGHEST


def _mha_kernel(q_ref, k_ref, v_ref,
                wq_ref, wk_ref, wv_ref,
                bq_ref, bk_ref, bv_ref,
                wo_ref, bo_ref,
                o_ref, *, num_heads, head_size):
    TB, S, E = q_ref.shape
    NH = num_heads * head_size

    # ---- Fused projections: one lane-dense (TB*S, E) x (E, N*H) matmul each.
    q2 = q_ref[...].reshape(TB * S, E)
    k2 = k_ref[...].reshape(TB * S, E)
    v2 = v_ref[...].reshape(TB * S, E)

    qp = (jnp.dot(q2, wq_ref[...], preferred_element_type=jnp.float32,
                  precision=_HI) + bq_ref[...]).reshape(TB, S, NH)
    kp = (jnp.dot(k2, wk_ref[...], preferred_element_type=jnp.float32,
                  precision=_HI) + bk_ref[...]).reshape(TB, S, NH)
    vp = (jnp.dot(v2, wv_ref[...], preferred_element_type=jnp.float32,
                  precision=_HI) + bv_ref[...]).reshape(TB, S, NH)

    inv_sqrt_dk = jnp.float32(1.0 / (float(head_size) ** 0.5))

    # ---- Per-head attention (small), batched over the packed batch dim.
    head_outs = []
    for n in range(num_heads):
        lo = n * head_size
        hi = lo + head_size
        qh = qp[:, :, lo:hi]                        # (TB, Sq, H)
        kh = kp[:, :, lo:hi]                        # (TB, Sk, H)
        vh = vp[:, :, lo:hi]                        # (TB, Sk, H)

        # scores 'bqh,bkh->bqk': contract H directly (no transpose / XLU copy).
        sc = jax.lax.dot_general(
            qh, kh,
            dimension_numbers=(((2,), (2,)), ((0,), (0,))),
            preferred_element_type=jnp.float32,
            precision=_HI) * inv_sqrt_dk            # (TB, Sq, Sk)

        # The reference module softmaxes over dim=2 of (b, n, q, k),
        # i.e. the *query* axis — axis 1 of (TB, Sq, Sk) here.
        m = jnp.max(sc, axis=1, keepdims=True)
        e = jnp.exp(sc - m)
        sm = e / jnp.sum(e, axis=1, keepdims=True)  # exact reciprocal (sharp softmax)

        # attend 'bqk,bkv->bqv'
        head_outs.append(jax.lax.dot_general(
            sm, vh,
            dimension_numbers=(((2,), (1,)), ((0,), (0,))),
            preferred_element_type=jnp.float32,
            precision=_HI))                         # (TB, Sq, H)

    # (n v)-ordered concat matches torch's rearrange 'b n q v -> b q (n v)'.
    heads = jnp.concatenate(head_outs, axis=-1).reshape(TB * S, NH)

    # ---- Single lane-dense output projection + bias, written exactly once.
    out = (jnp.dot(heads, wo_ref[...], preferred_element_type=jnp.float32,
                   precision=_HI) + bo_ref[...])
    o_ref[...] = out.reshape(TB, S, E)


def _pick_batch_block(B, S):
    """Largest divisor of B that keeps TB*S <= 1024 rows, preferring >= 256."""
    best = 1
    for tb in range(1, B + 1):
        if B % tb == 0 and tb * S <= 1024:
            best = tb
            if tb * S >= 256:
                break
    return best


def my_multihead(q, k, v, params, *, num_heads, batch_block=None):
    B, S, E = q.shape
    assert E % num_heads == 0
    H = E // num_heads
    NH = num_heads * H

    # Fuse the head axis into the weight layout once, outside the kernel.
    wq_f = jnp.transpose(params["weight_q"], (1, 0, 2)).reshape(E, NH)   # (E, N*H)
    wk_f = jnp.transpose(params["weight_k"], (1, 0, 2)).reshape(E, NH)
    wv_f = jnp.transpose(params["weight_v"], (1, 0, 2)).reshape(E, NH)
    bq_f = params["bias_q"].reshape(1, NH)                               # (1, N*H)
    bk_f = params["bias_k"].reshape(1, NH)
    bv_f = params["bias_v"].reshape(1, NH)
    wo = params["weight_o"]                                              # (N*H, E)
    bo = params["bias_o"]                                                # (1, E)

    TB = batch_block if batch_block is not None else _pick_batch_block(B, S)
    assert B % TB == 0
    grid = (B // TB,)

    io_spec = pl.BlockSpec((TB, S, E), lambda i: (i, 0, 0))
    w_spec  = pl.BlockSpec((E, NH),    lambda i: (0, 0))   # resident weights
    pb_spec = pl.BlockSpec((1, NH),    lambda i: (0, 0))   # resident proj biases
    wo_spec = pl.BlockSpec((NH, E),    lambda i: (0, 0))
    bo_spec = pl.BlockSpec((1, E),     lambda i: (0, 0))

    return pl.pallas_call(
        partial(_mha_kernel, num_heads=num_heads, head_size=H),
        out_shape=jax.ShapeDtypeStruct((B, S, E), jnp.float32),
        grid_spec=pltpu.PrefetchScalarGridSpec(
            num_scalar_prefetch=0,
            grid=grid,
            in_specs=[io_spec, io_spec, io_spec,
                      w_spec, w_spec, w_spec,
                      pb_spec, pb_spec, pb_spec,
                      wo_spec, bo_spec],
            out_specs=io_spec,
        ),
        compiler_params=pltpu.CompilerParams(
            dimension_semantics=("parallel",)),
    )(q, k, v, wq_f, wk_f, wv_f, bq_f, bk_f, bv_f, wo, bo)


def my_multihead_ref(q, k, v, params, *, num_heads):
    """Pure-JAX reference mirroring the PyTorch forward exactly (f32 matmuls)."""
    H = q.shape[-1] // num_heads
    qwq = jnp.einsum('bse,neh->bnsh', q, params["weight_q"],
                     precision=_HI) + params["bias_q"]
    kwk = jnp.einsum('bse,neh->bnsh', k, params["weight_k"],
                     precision=_HI) + params["bias_k"]
    vwv = jnp.einsum('bse,nev->bnsv', v, params["weight_v"],
                     precision=_HI) + params["bias_v"]
    scores = jnp.einsum('bnqh,bnkh->bnqk', qwq, kwk, precision=_HI) / (H ** 0.5)
    sm = jax.nn.softmax(scores, axis=2)     # softmax over the query axis, as in the module
    heads = jnp.einsum('bnqk,bnkv->bnqv', sm, vwv, precision=_HI)
    headscat = jnp.transpose(heads, (0, 2, 1, 3)).reshape(q.shape[0], q.shape[1], -1)
    return jnp.einsum('bqj,je->bqe', headscat, params["weight_o"],
                      precision=_HI) + params["bias_o"]


if __name__ == "__main__":
    B, S, E, N = 2, 8, 32, 4
    H = E // N

    key = jax.random.PRNGKey(0)
    ks = jax.random.split(key, 11)
    params = {
        "weight_q": jax.random.normal(ks[0], (N, E, H), jnp.float32),
        "weight_k": jax.random.normal(ks[1], (N, E, H), jnp.float32),
        "weight_v": jax.random.normal(ks[2], (N, E, H), jnp.float32),
        "weight_o": jax.random.normal(ks[3], (N * H, E), jnp.float32),
        "bias_q":   jax.random.normal(ks[4], (N, 1, H), jnp.float32),
        "bias_k":   jax.random.normal(ks[5], (N, 1, H), jnp.float32),
        "bias_v":   jax.random.normal(ks[6], (N, 1, H), jnp.float32),
        "bias_o":   jax.random.normal(ks[7], (1, E), jnp.float32),
    }
    q = jax.random.normal(ks[8], (B, S, E), jnp.float32)
    k = jax.random.normal(ks[9], (B, S, E), jnp.float32)
    v = jax.random.normal(ks[10], (B, S, E), jnp.float32)

    out = my_multihead(q, k, v, params, num_heads=N)
    out = jax.block_until_ready(out)

    ref = my_multihead_ref(q, k, v, params, num_heads=N)
    assert out.shape == (B, S, E)
    # Both kernel and reference run all matmuls at HIGHEST precision with f32
    # accumulation, so this tolerance has ample margin even through the very
    # sharp (randn-scale) query-axis softmax.
    assert jnp.allclose(out, ref, atol=2e-2, rtol=2e-2), "mismatch vs reference"

    print("KERNEL_OK")
</pallas_src>

<mosaic_0001>
module attributes {stable_mosaic.version = 11 : i64} {
  func.func @_mha_kernel(%arg0: i32, %arg1: memref<2x8x32xf32, #tpu.memory_space<vmem>>, %arg2: memref<2x8x32xf32, #tpu.memory_space<vmem>>, %arg3: memref<2x8x32xf32, #tpu.memory_space<vmem>>, %arg4: memref<32x32xf32, #tpu.memory_space<vmem>>, %arg5: memref<32x32xf32, #tpu.memory_space<vmem>>, %arg6: memref<32x32xf32, #tpu.memory_space<vmem>>, %arg7: memref<1x32xf32, #tpu.memory_space<vmem>>, %arg8: memref<1x32xf32, #tpu.memory_space<vmem>>, %arg9: memref<1x32xf32, #tpu.memory_space<vmem>>, %arg10: memref<32x32xf32, #tpu.memory_space<vmem>>, %arg11: memref<1x32xf32, #tpu.memory_space<vmem>>, %arg12: memref<2x8x32xf32, #tpu.memory_space<vmem>>) attributes {dimension_semantics = [#tpu.dimension_semantics<parallel>], iteration_bounds = array<i64: 1>, scalar_prefetch = 0 : i64, scratch_operands = 0 : i64, tpu.core_type = #tpu.core_type<tc>, window_params = [{transform_indices = @transform_0, window_bounds = array<i64: 2, 8, 32>}, {transform_indices = @transform_1, window_bounds = array<i64: 2, 8, 32>}, {transform_indices = @transform_2, window_bounds = array<i64: 2, 8, 32>}, {pipeline_mode = #tpu.pipeline_mode<synchronous>, transform_indices = @transform_3, window_bounds = array<i64: 32, 32>}, {pipeline_mode = #tpu.pipeline_mode<synchronous>, transform_indices = @transform_4, window_bounds = array<i64: 32, 32>}, {pipeline_mode = #tpu.pipeline_mode<synchronous>, transform_indices = @transform_5, window_bounds = array<i64: 32, 32>}, {pipeline_mode = #tpu.pipeline_mode<synchronous>, transform_indices = @transform_6, window_bounds = array<i64: 1, 32>}, {pipeline_mode = #tpu.pipeline_mode<synchronous>, transform_indices = @transform_7, window_bounds = array<i64: 1, 32>}, {pipeline_mode = #tpu.pipeline_mode<synchronous>, transform_indices = @transform_8, window_bounds = array<i64: 1, 32>}, {pipeline_mode = #tpu.pipeline_mode<synchronous>, transform_indices = @transform_9, window_bounds = array<i64: 32, 32>}, {pipeline_mode = #tpu.pipeline_mode<synchronous>, transform_indices = @transform_10, window_bounds = array<i64: 1, 32>}, {transform_indices = @transform_11, window_bounds = array<i64: 2, 8, 32>}]} {
    %c0 = arith.constant 0 : index
    %c0_0 = arith.constant 0 : index
    %c0_1 = arith.constant 0 : index
    %0 = vector.load %arg1[%c0, %c0_0, %c0_1] : memref<2x8x32xf32, #tpu.memory_space<vmem>>, vector<2x8x32xf32>
    %1 = vector.shape_cast %0 : vector<2x8x32xf32> to vector<16x32xf32>
    %c0_2 = arith.constant 0 : index
    %c0_3 = arith.constant 0 : index
    %c0_4 = arith.constant 0 : index
    %2 = vector.load %arg2[%c0_2, %c0_3, %c0_4] : memref<2x8x32xf32, #tpu.memory_space<vmem>>, vector<2x8x32xf32>
    %3 = vector.shape_cast %2 : vector<2x8x32xf32> to vector<16x32xf32>
    %c0_5 = arith.constant 0 : index
    %c0_6 = arith.constant 0 : index
    %c0_7 = arith.constant 0 : index
    %4 = vector.load %arg3[%c0_5, %c0_6, %c0_7] : memref<2x8x32xf32, #tpu.memory_space<vmem>>, vector<2x8x32xf32>
    %5 = vector.shape_cast %4 : vector<2x8x32xf32> to vector<16x32xf32>
    %c0_8 = arith.constant 0 : index
    %c0_9 = arith.constant 0 : index
    %6 = vector.load %arg4[%c0_8, %c0_9] : memref<32x32xf32, #tpu.memory_space<vmem>>, vector<32x32xf32>
    %cst = arith.constant dense<0.000000e+00> : vector<16x32xf32>
    %7 = tpu.matmul %1, %6, %cst {dimension_numbers = #tpu.dot_dimension_numbers<[1], [0], [0], [1], [0, 0, 1, 1], [], []>, precision = #tpu.contract_precision<fp32>} : vector<16x32xf32>, vector<32x32xf32>, vector<16x32xf32> -> vector<16x32xf32>
    %c0_10 = arith.constant 0 : index
    %c0_11 = arith.constant 0 : index
    %8 = vector.load %arg7[%c0_10, %c0_11] : memref<1x32xf32, #tpu.memory_space<vmem>>, vector<1x32xf32>
    %9 = vector.broadcast %8 : vector<1x32xf32> to vector<16x32xf32>
    %10 = arith.addf %7, %9 : vector<16x32xf32>
    %11 = vector.shape_cast %10 : vector<16x32xf32> to vector<2x8x32xf32>
    %c0_12 = arith.constant 0 : index
    %c0_13 = arith.constant 0 : index
    %12 = vector.load %arg5[%c0_12, %c0_13] : memref<32x32xf32, #tpu.memory_space<vmem>>, vector<32x32xf32>
    %cst_14 = arith.constant dense<0.000000e+00> : vector<16x32xf32>
    %13 = tpu.matmul %3, %12, %cst_14 {dimension_numbers = #tpu.dot_dimension_numbers<[1], [0], [0], [1], [0, 0, 1, 1], [], []>, precision = #tpu.contract_precision<fp32>} : vector<16x32xf32>, vector<32x32xf32>, vector<16x32xf32> -> vector<16x32xf32>
    %c0_15 = arith.constant 0 : index
    %c0_16 = arith.constant 0 : index
    %14 = vector.load %arg8[%c0_15, %c0_16] : memref<1x32xf32, #tpu.memory_space<vmem>>, vector<1x32xf32>
    %15 = vector.broadcast %14 : vector<1x32xf32> to vector<16x32xf32>
    %16 = arith.addf %13, %15 : vector<16x32xf32>
    %17 = vector.shape_cast %16 : vector<16x32xf32> to vector<2x8x32xf32>
    %c0_17 = arith.constant 0 : index
    %c0_18 = arith.constant 0 : index
    %18 = vector.load %arg6[%c0_17, %c0_18] : memref<32x32xf32, #tpu.memory_space<vmem>>, vector<32x32xf32>
    %cst_19 = arith.constant dense<0.000000e+00> : vector<16x32xf32>
    %19 = tpu.matmul %5, %18, %cst_19 {dimension_numbers = #tpu.dot_dimension_numbers<[1], [0], [0], [1], [0, 0, 1, 1], [], []>, precision = #tpu.contract_precision<fp32>} : vector<16x32xf32>, vector<32x32xf32>, vector<16x32xf32> -> vector<16x32xf32>
    %c0_20 = arith.constant 0 : index
    %c0_21 = arith.constant 0 : index
    %20 = vector.load %arg9[%c0_20, %c0_21] : memref<1x32xf32, #tpu.memory_space<vmem>>, vector<1x32xf32>
    %21 = vector.broadcast %20 : vector<1x32xf32> to vector<16x32xf32>
    %22 = arith.addf %19, %21 : vector<16x32xf32>
    %23 = vector.shape_cast %22 : vector<16x32xf32> to vector<2x8x32xf32>
    %24 = vector.extract_strided_slice %11 {offsets = [0, 0, 0], sizes = [2, 8, 8], strides = [1, 1, 1]} : vector<2x8x32xf32> to vector<2x8x8xf32>
    %25 = vector.extract_strided_slice %17 {offsets = [0, 0, 0], sizes = [2, 8, 8], strides = [1, 1, 1]} : vector<2x8x32xf32> to vector<2x8x8xf32>
    %26 = vector.extract_strided_slice %23 {offsets = [0, 0, 0], sizes = [2, 8, 8], strides = [1, 1, 1]} : vector<2x8x32xf32> to vector<2x8x8xf32>
    %cst_22 = arith.constant dense<0.000000e+00> : vector<2x8x8xf32>
    %27 = tpu.matmul %24, %25, %cst_22 {dimension_numbers = #tpu.dot_dimension_numbers<[2], [2], [1], [1], [0, 0, 0, 1, 1, 1], [0], [0]>, precision = #tpu.contract_precision<fp32>} : vector<2x8x8xf32>, vector<2x8x8xf32>, vector<2x8x8xf32> -> vector<2x8x8xf32>
    %cst_23 = arith.constant 0.353553385 : f32
    %28 = vector.broadcast %cst_23 : f32 to vector<2x8x8xf32>
    %29 = arith.mulf %27, %28 : vector<2x8x8xf32>
    %cst_24 = arith.constant dense<0xFF800000> : vector<2x8xf32>
    %30 = vector.multi_reduction <maximumf>, %29, %cst_24 [1] : vector<2x8x8xf32> to vector<2x8xf32>
    %31 = vector.shape_cast %30 : vector<2x8xf32> to vector<2x1x8xf32>
    %32 = vector.broadcast %31 : vector<2x1x8xf32> to vector<2x8x8xf32>
    %33 = arith.subf %29, %32 : vector<2x8x8xf32>
    %34 = math.exp %33 : vector<2x8x8xf32>
    %cst_25 = arith.constant dense<0.000000e+00> : vector<2x8xf32>
    %35 = vector.multi_reduction <add>, %34, %cst_25 [1] : vector<2x8x8xf32> to vector<2x8xf32>
    %36 = vector.shape_cast %35 : vector<2x8xf32> to vector<2x1x8xf32>
    %37 = vector.broadcast %36 : vector<2x1x8xf32> to vector<2x8x8xf32>
    %38 = arith.divf %34, %37 : vector<2x8x8xf32>
    %cst_26 = arith.constant dense<0.000000e+00> : vector<2x8x8xf32>
    %39 = tpu.matmul %38, %26, %cst_26 {dimension_numbers = #tpu.dot_dimension_numbers<[2], [1], [1], [2], [0, 0, 0, 1, 1, 2], [0], [0]>, precision = #tpu.contract_precision<fp32>} : vector<2x8x8xf32>, vector<2x8x8xf32>, vector<2x8x8xf32> -> vector<2x8x8xf32>
    %40 = vector.extract_strided_slice %11 {offsets = [0, 0, 8], sizes = [2, 8, 8], strides = [1, 1, 1]} : vector<2x8x32xf32> to vector<2x8x8xf32>
    %41 = vector.extract_strided_slice %17 {offsets = [0, 0, 8], sizes = [2, 8, 8], strides = [1, 1, 1]} : vector<2x8x32xf32> to vector<2x8x8xf32>
    %42 = vector.extract_strided_slice %23 {offsets = [0, 0, 8], sizes = [2, 8, 8], strides = [1, 1, 1]} : vector<2x8x32xf32> to vector<2x8x8xf32>
    %cst_27 = arith.constant dense<0.000000e+00> : vector<2x8x8xf32>
    %43 = tpu.matmul %40, %41, %cst_27 {dimension_numbers = #tpu.dot_dimension_numbers<[2], [2], [1], [1], [0, 0, 0, 1, 1, 1], [0], [0]>, precision = #tpu.contract_precision<fp32>} : vector<2x8x8xf32>, vector<2x8x8xf32>, vector<2x8x8xf32> -> vector<2x8x8xf32>
    %cst_28 = arith.constant 0.353553385 : f32
    %44 = vector.broadcast %cst_28 : f32 to vector<2x8x8xf32>
    %45 = arith.mulf %43, %44 : vector<2x8x8xf32>
    %cst_29 = arith.constant dense<0xFF800000> : vector<2x8xf32>
    %46 = vector.multi_reduction <maximumf>, %45, %cst_29 [1] : vector<2x8x8xf32> to vector<2x8xf32>
    %47 = vector.shape_cast %46 : vector<2x8xf32> to vector<2x1x8xf32>
    %48 = vector.broadcast %47 : vector<2x1x8xf32> to vector<2x8x8xf32>
    %49 = arith.subf %45, %48 : vector<2x8x8xf32>
    %50 = math.exp %49 : vector<2x8x8xf32>
    %cst_30 = arith.constant dense<0.000000e+00> : vector<2x8xf32>
    %51 = vector.multi_reduction <add>, %50, %cst_30 [1] : vector<2x8x8xf32> to vector<2x8xf32>
    %52 = vector.shape_cast %51 : vector<2x8xf32> to vector<2x1x8xf32>
    %53 = vector.broadcast %52 : vector<2x1x8xf32> to vector<2x8x8xf32>
    %54 = arith.divf %50, %53 : vector<2x8x8xf32>
    %cst_31 = arith.constant dense<0.000000e+00> : vector<2x8x8xf32>
    %55 = tpu.matmul %54, %42, %cst_31 {dimension_numbers = #tpu.dot_dimension_numbers<[2], [1], [1], [2], [0, 0, 0, 1, 1, 2], [0], [0]>, precision = #tpu.contract_precision<fp32>} : vector<2x8x8xf32>, vector<2x8x8xf32>, vector<2x8x8xf32> -> vector<2x8x8xf32>
    %56 = vector.extract_strided_slice %11 {offsets = [0, 0, 16], sizes = [2, 8, 8], strides = [1, 1, 1]} : vector<2x8x32xf32> to vector<2x8x8xf32>
    %57 = vector.extract_strided_slice %17 {offsets = [0, 0, 16], sizes = [2, 8, 8], strides = [1, 1, 1]} : vector<2x8x32xf32> to vector<2x8x8xf32>
    %58 = vector.extract_strided_slice %23 {offsets = [0, 0, 16], sizes = [2, 8, 8], strides = [1, 1, 1]} : vector<2x8x32xf32> to vector<2x8x8xf32>
    %cst_32 = arith.constant dense<0.000000e+00> : vector<2x8x8xf32>
    %59 = tpu.matmul %56, %57, %cst_32 {dimension_numbers = #tpu.dot_dimension_numbers<[2], [2], [1], [1], [0, 0, 0, 1, 1, 1], [0], [0]>, precision = #tpu.contract_precision<fp32>} : vector<2x8x8xf32>, vector<2x8x8xf32>, vector<2x8x8xf32> -> vector<2x8x8xf32>
    %cst_33 = arith.constant 0.353553385 : f32
    %60 = vector.broadcast %cst_33 : f32 to vector<2x8x8xf32>
    %61 = arith.mulf %59, %60 : vector<2x8x8xf32>
    %cst_34 = arith.constant dense<0xFF800000> : vector<2x8xf32>
    %62 = vector.multi_reduction <maximumf>, %61, %cst_34 [1] : vector<2x8x8xf32> to vector<2x8xf32>
    %63 = vector.shape_cast %62 : vector<2x8xf32> to vector<2x1x8xf32>
    %64 = vector.broadcast %63 : vector<2x1x8xf32> to vector<2x8x8xf32>
    %65 = arith.subf %61, %64 : vector<2x8x8xf32>
    %66 = math.exp %65 : vector<2x8x8xf32>
    %cst_35 = arith.constant dense<0.000000e+00> : vector<2x8xf32>
    %67 = vector.multi_reduction <add>, %66, %cst_35 [1] : vector<2x8x8xf32> to vector<2x8xf32>
    %68 = vector.shape_cast %67 : vector<2x8xf32> to vector<2x1x8xf32>
    %69 = vector.broadcast %68 : vector<2x1x8xf32> to vector<2x8x8xf32>
    %70 = arith.divf %66, %69 : vector<2x8x8xf32>
    %cst_36 = arith.constant dense<0.000000e+00> : vector<2x8x8xf32>
    %71 = tpu.matmul %70, %58, %cst_36 {dimension_numbers = #tpu.dot_dimension_numbers<[2], [1], [1], [2], [0, 0, 0, 1, 1, 2], [0], [0]>, precision = #tpu.contract_precision<fp32>} : vector<2x8x8xf32>, vector<2x8x8xf32>, vector<2x8x8xf32> -> vector<2x8x8xf32>
    %72 = vector.extract_strided_slice %11 {offsets = [0, 0, 24], sizes = [2, 8, 8], strides = [1, 1, 1]} : vector<2x8x32xf32> to vector<2x8x8xf32>
    %73 = vector.extract_strided_slice %17 {offsets = [0, 0, 24], sizes = [2, 8, 8], strides = [1, 1, 1]} : vector<2x8x32xf32> to vector<2x8x8xf32>
    %74 = vector.extract_strided_slice %23 {offsets = [0, 0, 24], sizes = [2, 8, 8], strides = [1, 1, 1]} : vector<2x8x32xf32> to vector<2x8x8xf32>
    %cst_37 = arith.constant dense<0.000000e+00> : vector<2x8x8xf32>
    %75 = tpu.matmul %72, %73, %cst_37 {dimension_numbers = #tpu.dot_dimension_numbers<[2], [2], [1], [1], [0, 0, 0, 1, 1, 1], [0], [0]>, precision = #tpu.contract_precision<fp32>} : vector<2x8x8xf32>, vector<2x8x8xf32>, vector<2x8x8xf32> -> vector<2x8x8xf32>
    %cst_38 = arith.constant 0.353553385 : f32
    %76 = vector.broadcast %cst_38 : f32 to vector<2x8x8xf32>
    %77 = arith.mulf %75, %76 : vector<2x8x8xf32>
    %cst_39 = arith.constant dense<0xFF800000> : vector<2x8xf32>
    %78 = vector.multi_reduction <maximumf>, %77, %cst_39 [1] : vector<2x8x8xf32> to vector<2x8xf32>
    %79 = vector.shape_cast %78 : vector<2x8xf32> to vector<2x1x8xf32>
    %80 = vector.broadcast %79 : vector<2x1x8xf32> to vector<2x8x8xf32>
    %81 = arith.subf %77, %80 : vector<2x8x8xf32>
    %82 = math.exp %81 : vector<2x8x8xf32>
    %cst_40 = arith.constant dense<0.000000e+00> : vector<2x8xf32>
    %83 = vector.multi_reduction <add>, %82, %cst_40 [1] : vector<2x8x8xf32> to vector<2x8xf32>
    %84 = vector.shape_cast %83 : vector<2x8xf32> to vector<2x1x8xf32>
    %85 = vector.broadcast %84 : vector<2x1x8xf32> to vector<2x8x8xf32>
    %86 = arith.divf %82, %85 : vector<2x8x8xf32>
    %cst_41 = arith.constant dense<0.000000e+00> : vector<2x8x8xf32>
    %87 = tpu.matmul %86, %74, %cst_41 {dimension_numbers = #tpu.dot_dimension_numbers<[2], [1], [1], [2], [0, 0, 0, 1, 1, 2], [0], [0]>, precision = #tpu.contract_precision<fp32>} : vector<2x8x8xf32>, vector<2x8x8xf32>, vector<2x8x8xf32> -> vector<2x8x8xf32>
    %88 = tpu.concatenate %39, %55, %71, %87 in 2 : vector<2x8x8xf32>, vector<2x8x8xf32>, vector<2x8x8xf32>, vector<2x8x8xf32> -> vector<2x8x32xf32>
    %89 = vector.shape_cast %88 : vector<2x8x32xf32> to vector<16x32xf32>
    %c0_42 = arith.constant 0 : index
    %c0_43 = arith.constant 0 : index
    %90 = vector.load %arg10[%c0_42, %c0_43] : memref<32x32xf32, #tpu.memory_space<vmem>>, vector<32x32xf32>
    %cst_44 = arith.constant dense<0.000000e+00> : vector<16x32xf32>
    %91 = tpu.matmul %89, %90, %cst_44 {dimension_numbers = #tpu.dot_dimension_numbers<[1], [0], [0], [1], [0, 0, 1, 1], [], []>, precision = #tpu.contract_precision<fp32>} : vector<16x32xf32>, vector<32x32xf32>, vector<16x32xf32> -> vector<16x32xf32>
    %c0_45 = arith.constant 0 : index
    %c0_46 = arith.constant 0 : index
    %92 = vector.load %arg11[%c0_45, %c0_46] : memref<1x32xf32, #tpu.memory_space<vmem>>, vector<1x32xf32>
    %93 = vector.broadcast %92 : vector<1x32xf32> to vector<16x32xf32>
    %94 = arith.addf %91, %93 : vector<16x32xf32>
    %95 = vector.shape_cast %94 : vector<16x32xf32> to vector<2x8x32xf32>
    %c0_47 = arith.constant 0 : index
    %c0_48 = arith.constant 0 : index
    %c0_49 = arith.constant 0 : index
    %96 = vector.load %arg12[%c0_47, %c0_48, %c0_49] : memref<2x8x32xf32, #tpu.memory_space<vmem>>, vector<2x8x32xf32>
    tpu.vector_store %arg12[%c0_47, %c0_48, %c0_49], %95 {strides = array<i32>} : memref<2x8x32xf32, #tpu.memory_space<vmem>>, vector<2x8x32xf32>,
    return
  }
  func.func @transform_0(%arg0: i32) -> (i32, i32, i32) {
    %c0_i32 = arith.constant 0 : i32
    %c0_i32_0 = arith.constant 0 : i32
    %c0_i32_1 = arith.constant 0 : i32
    return %arg0, %c0_i32, %c0_i32_0 : i32, i32, i32
  }
  func.func @transform_1(%arg0: i32) -> (i32, i32, i32) {
    %c0_i32 = arith.constant 0 : i32
    %c0_i32_0 = arith.constant 0 : i32
    %c0_i32_1 = arith.constant 0 : i32
    return %arg0, %c0_i32, %c0_i32_0 : i32, i32, i32
  }
  func.func @transform_2(%arg0: i32) -> (i32, i32, i32) {
    %c0_i32 = arith.constant 0 : i32
    %c0_i32_0 = arith.constant 0 : i32
    %c0_i32_1 = arith.constant 0 : i32
    return %arg0, %c0_i32, %c0_i32_0 : i32, i32, i32
  }
  func.func @transform_3(%arg0: i32) -> (i32, i32) {
    %c0_i32 = arith.constant 0 : i32
    %c0_i32_0 = arith.constant 0 : i32
    %c0_i32_1 = arith.constant 0 : i32
    return %c0_i32, %c0_i32_0 : i32, i32
  }
  func.func @transform_4(%arg0: i32) -> (i32, i32) {
    %c0_i32 = arith.constant 0 : i32
    %c0_i32_0 = arith.constant 0 : i32
    %c0_i32_1 = arith.constant 0 : i32
    return %c0_i32, %c0_i32_0 : i32, i32
  }
  func.func @transform_5(%arg0: i32) -> (i32, i32) {
    %c0_i32 = arith.constant 0 : i32
    %c0_i32_0 = arith.constant 0 : i32
    %c0_i32_1 = arith.constant 0 : i32
    return %c0_i32, %c0_i32_0 : i32, i32
  }
  func.func @transform_6(%arg0: i32) -> (i32, i32) {
    %c0_i32 = arith.constant 0 : i32
    %c0_i32_0 = arith.constant 0 : i32
    %c0_i32_1 = arith.constant 0 : i32
    return %c0_i32, %c0_i32_0 : i32, i32
  }
  func.func @transform_7(%arg0: i32) -> (i32, i32) {
    %c0_i32 = arith.constant 0 : i32
    %c0_i32_0 = arith.constant 0 : i32
    %c0_i32_1 = arith.constant 0 : i32
    return %c0_i32, %c0_i32_0 : i32, i32
  }
  func.func @transform_8(%arg0: i32) -> (i32, i32) {
    %c0_i32 = arith.constant 0 : i32
    %c0_i32_0 = arith.constant 0 : i32
    %c0_i32_1 = arith.constant 0 : i32
    return %c0_i32, %c0_i32_0 : i32, i32
  }
  func.func @transform_9(%arg0: i32) -> (i32, i32) {
    %c0_i32 = arith.constant 0 : i32
    %c0_i32_0 = arith.constant 0 : i32
    %c0_i32_1 = arith.constant 0 : i32
    return %c0_i32, %c0_i32_0 : i32, i32
  }
  func.func @transform_10(%arg0: i32) -> (i32, i32) {
    %c0_i32 = arith.constant 0 : i32
    %c0_i32_0 = arith.constant 0 : i32
    %c0_i32_1 = arith.constant 0 : i32
    return %c0_i32, %c0_i32_0 : i32, i32
  }
  func.func @transform_11(%arg0: i32) -> (i32, i32, i32) {
    %c0_i32 = arith.constant 0 : i32
    %c0_i32_0 = arith.constant 0 : i32
    %c0_i32_1 = arith.constant 0 : i32
    return %arg0, %c0_i32, %c0_i32_0 : i32, i32, i32
  }
}

</mosaic_0001>

<bundles_post_ra>
// kernel: tpu_custom_call.1
= control target key start
LH: loop header
LB: loop body
LE: loop exit
PB: predicated region body
PF: predicated region fallthrough
CT: control target
= control target key end

     0   :  { %16 = vsyncpa [#allocation3], 0  ;;  %s4696_s0 = inlined_call_operand.hbm [shape: f32[2,8,32], index: 0, kind: input, shape index: {}]   ;;  %s4697_s1 = inlined_call_operand.hbm [shape: f32[2,8,32], index: 1, kind: input, shape index: {}]   ;;  %s4698_s2 = inlined_call_operand.hbm [shape: f32[2,8,32], index: 2, kind: input, shape index: {}]   ;;  %s4699_s3 = inlined_call_operand.hbm [shape: f32[32,32], index: 3, kind: input, shape index: {}]   ;;  %s4700_s4 = inlined_call_operand.hbm [shape: f32[32,32], index: 4, kind: input, shape index: {}]   ;;  %s4701_s5 = inlined_call_operand.hbm [shape: f32[32,32], index: 5, kind: input, shape index: {}]   ;;  %s4702_s6 = inlined_call_operand.vmem [shape: f32[1,32], index: 6, kind: input, shape index: {}]   ;;  %s4703_s7 = inlined_call_operand.vmem [shape: f32[1,32], index: 7, kind: input, shape index: {}]   ;;  %s4704_s8 = inlined_call_operand.vmem [shape: f32[1,32], index: 8, kind: input, shape index: {}]   ;;  %s4705_s9 = inlined_call_operand.hbm [shape: f32[32,32], index: 9, kind: input, shape index: {}]   ;;  %s4706_s10 = inlined_call_operand.vmem [shape: f32[1,32], index: 10, kind: input, shape index: {}]   ;;  %s4707_s11 = inlined_call_operand.hbm [shape: f32[2,8,32], index: 11, kind: output, shape index: {}]  }
   0x1   :  { %17 = vsyncpa [#allocation6], 0 }
   0x2   :  { %18 = vsyncpa [#allocation9], 0 }
   0x3   :  { %19 = vsyncpa [#allocation12], 0 }
   0x4   :  { %20 = vsyncpa [#allocation4], 0  ;;  %s38_s19 = sshll.u32 %s4697_s1, 4  ;;  %s4097_s20 = smov [#allocation5]   ;;  %s39_s19 = int_to_ptr.hbm [resolvable:$true] %s38_s19 }
   0x5   :  { %s40_s21 = sshll.u32 %s4097_s20, 4  ;;  %s64_s24 = sshll.u32 %s4699_s3, 4  ;;  %s41_s21 = int_to_ptr.vmem [resolvable:$true] %s40_s21  ;;  %s65_s24 = int_to_ptr.hbm [resolvable:$true] %s64_s24 }
   0x6   :  { %s4098_s25 = smov 128   ;;  %s4099_s26 = smov 8  }
   0x7   :  { %46 = dma.hbm_to_vmem [thread:$0]  %s39_s19, 256, %s41_s21, [#allocation6], %s4098_s25, %s4098_s25, %s4099_s26  }
   0x8   :  { %s4100_s27 = smov [#allocation8]   ;;  %s90_s1 = sshll.u32 %s4701_s5, 4  ;;  %s91_s1 = int_to_ptr.hbm [resolvable:$true] %s90_s1 }
   0x9   :  { %s66_s28 = sshll.u32 %s4100_s27, 4  ;;  %s25_s13 = sshll.u32 %s4696_s0, 4  ;;  %s67_s28 = int_to_ptr.vmem [resolvable:$true] %s66_s28  ;;  %s26_s13 = int_to_ptr.hbm [resolvable:$true] %s25_s13 }
   0xa   :  { %72 = dma.hbm_to_vmem [thread:$0]  %s65_s24, 512, %s67_s28, [#allocation9], %s4098_s25, %s4098_s25, %s4099_s26  }
   0xb   :  { %s4101_s14 = smov [#allocation11]   ;;  %s4102_s16 = smov [#allocation2]  }
   0xc   :  { %s92_s15 = sshll.u32 %s4101_s14, 4  ;;  %s27_s5 = sshll.u32 %s4102_s16, 4  ;;  %s93_s15 = int_to_ptr.vmem [resolvable:$true] %s92_s15  ;;  %s28_s5 = int_to_ptr.vmem [resolvable:$true] %s27_s5 }
   0xd   :  { %98 = dma.hbm_to_vmem [thread:$0]  %s91_s1, 512, %s93_s15, [#allocation12], %s4098_s25, %s4098_s25, %s4099_s26  }
   0xe   :  { %s51_s19 = sshll.u32 %s4698_s2, 4  ;;  %s77_s21 = sshll.u32 %s4700_s4, 4  ;;  %s52_s19 = int_to_ptr.hbm [resolvable:$true] %s51_s19  ;;  %s78_s21 = int_to_ptr.hbm [resolvable:$true] %s77_s21 }
   0xf   :  { %33 = dma.hbm_to_vmem [thread:$0]  %s26_s13, 256, %s28_s5, [#allocation3], %s4098_s25, %s4098_s25, %s4099_s26  }
  0x10   :  { %s4103_s22 = smov [#allocation7]   ;;  %s4104_s24 = smov [#allocation10]  }
  0x11   :  { %s53_s23 = sshll.u32 %s4103_s22, 4  ;;  %s79_s2 = sshll.u32 %s4104_s24, 4  ;;  %s54_s23 = int_to_ptr.vmem [resolvable:$true] %s53_s23  ;;  %s80_s2 = int_to_ptr.vmem [resolvable:$true] %s79_s2 }
  0x12   :  { %59 = dma.hbm_to_vmem [thread:$0]  %s52_s19, 256, %s54_s23, [#allocation6], %s4098_s25, %s4098_s25, %s4099_s26  }
  0x13   :  { %s109_s29 = sshll.u32 %s4705_s9, 4  ;;  %s4105_s4 = smov [#allocation13]   ;;  %s110_s29 = int_to_ptr.hbm [resolvable:$true] %s109_s29 }
  0x14   :  { %85 = dma.hbm_to_vmem [thread:$0]  %s78_s21, 512, %s80_s2, [#allocation9], %s4098_s25, %s4098_s25, %s4099_s26  }
  0x15   :  { %s111_s30 = sshll.u32 %s4105_s4, 4  ;;  %s112_s30 = int_to_ptr.vmem [resolvable:$true] %s111_s30 }
  0x16   :  { %117 = dma.hbm_to_vmem [thread:$0]  %s110_s29, 512, %s112_s30, [#allocation12], %s4098_s25, %s4098_s25, %s4099_s26  }
  0x17   :  { %4087 = dma.done.wait [#allocation3], 256  }
  0x18   :  { %4088 = vsyncadd [#allocation3], 4294967040 }
  0x19   :  { %4089 = dma.done.wait [#allocation6], 512  }
  0x1a   :  { %4090 = vsyncadd [#allocation6], 4294966784 }
  0x1b   :  { %4091 = dma.done.wait [#allocation9], 1024  }
  0x1c   :  { %4092 = vsyncadd [#allocation9], 4294966272 }
  0x1d   :  { %4093 = dma.done.wait [#allocation12], 1024  }
  0x1e   :  { %4094 = vsyncadd [#allocation12], 4294966272  ;;  %vm162_vm0 = vcmask 261120   ;;  %v157_v0 = vld [vmem:[#allocation8 + $0x18] sm:$0xff]  ;;  %v156_v1 = vld [vmem:[#allocation8 + $0x10] sm:$0xff]  ;;  %vm845_vm1 = vcmask 64512  }
  0x1f   :  { %v155_v2 = vld [vmem:[#allocation8 + $0x8] sm:$0xff]  ;;  %v4214_v3 = vand.u32 4294901760, %v157_v0  ;;  %v4216_v4 = vand.u32 4294901760, %v156_v1  ;;  %v154_v6 = vld [vmem:[#allocation8] sm:$0xff]  ;;  %v149_v7 = vld [vmem:[#allocation2 + $0x8] sm:$0xff]  ;;  %s4106_s13 = smov 120  }
  0x20   :  { %v4218_v5 = vand.u32 4294901760, %v155_v2  ;;  %v148_v8 = vld [vmem:[#allocation2] sm:$0xff]  ;;  %v4220_v9 = vand.u32 4294901760, %v154_v6  ;;  %v167_v10 = vsel %vm162_vm0, %v149_v7, 0  ;;  %v388_v16 = vld [vmem:[#allocation10 + $0x18] sm:$0xff]  ;;  %v386_v33 = vld [vmem:[#allocation10 + $0x8] sm:$0xff] }
  0x21   :  { %v164_v11 = vsel %vm162_vm0, %v148_v8, 0  ;;  %3836 = vmatpush.msra.mxu2 %v4214_v3  ;;  %v219_v12 = vsub.f32 %v157_v0, %v4214_v3  ;;  %v4226_v13 = vand.u32 4294901760, %v167_v10  ;;  %v225_v14 = vsub.f32 %v156_v1, %v4216_v4  ;;  %182 = vmatpush.msra.mxu0 %v4214_v3  ;;  %v387_v23 = vld [vmem:[#allocation10 + $0x10] sm:$0xff]  ;;  %v385_v39 = vld [vmem:[#allocation10] sm:$0xff]  ;;  %v151_v55 = vld [vmem:[#allocation5 + $0x8] sm:$0xff]  ;;  %s4108_s14 = smov 104  }
  0x22   :  { %v4230_v15 = vsub.f32 %v155_v2, %v4218_v5  ;;  %v4234_v17 = vsub.f32 %v154_v6, %v4220_v9  ;;  %v4236_v18 = vand.u32 4294901760, %v164_v11  ;;  %v4248_v26 = vand.u32 4294901760, %v388_v16  ;;  %v150_v44 = vld [vmem:[#allocation5] sm:$0xff]  ;;  %v618_v58 = vld [vmem:[#allocation11 + $0x18] sm:$0xff]  ;;  %v617_v0 = vld [vmem:[#allocation11 + $0x10] sm:$0xff]  ;;  %s4109_s15 = smov 16  }
  0x23   :  { %3837 = vmatpush.msra.mxu2 %v4216_v4  ;;  %v220_v19 = vand.u32 4294901760, %v219_v12  ;;  %v4240_v20 = vsub.f32 %v167_v10, %v4226_v13  ;;  %v226_v21 = vand.u32 4294901760, %v225_v14  ;;  %184 = vmatpush.msra.mxu0 %v4216_v4  ;;  %v4255_v32 = vand.u32 4294901760, %v387_v23  ;;  %v616_v7 = vld [vmem:[#allocation11 + $0x8] sm:$0xff]  ;;  %s4110_s16 = smov 24   ;;  %s3820_s20 = sshll.u32 %s4707_s11, 4  ;;  %s3821_s20 = int_to_ptr.hbm [resolvable:$true] %s3820_s20 }
  0x24   :  { %v232_v22 = vand.u32 4294901760, %v4230_v15  ;;  %v238_v24 = vand.u32 4294901760, %v4234_v17  ;;  %v4246_v25 = vsub.f32 %v164_v11, %v4236_v18  ;;  %v4269_v42 = vsub.f32 %v388_v16, %v4248_v26 }
  0x25   :  { %3838 = vmatpush.msra.mxu2 %v4218_v5  ;;  %v221_v27 = vsub.f32 %v219_v12, %v220_v19  ;;  %v199_v28 = vand.u32 4294901760, %v4240_v20  ;;  %v227_v29 = vsub.f32 %v225_v14, %v226_v21  ;;  %186 = vmatpush.msra.mxu0 %v4218_v5  ;;  %v4271_v43 = vand.u32 4294901760, %v386_v33 }
  0x26   :  { %v233_v30 = vsub.f32 %v4230_v15, %v232_v22  ;;  %v191_v31 = vand.u32 4294901760, %v4246_v25  ;;  %v239_v37 = vsub.f32 %v4234_v17, %v238_v24  ;;  %v4273_v47 = vand.u32 4294901760, %v385_v39 }
  0x27   :  { %3839 = vmatpush.msra.mxu2 %v4220_v9  ;;  %v222_v34 = vand.u32 4294901760, %v221_v27  ;;  %v200_v35 = vsub.f32 %v4240_v20, %v199_v28  ;;  %v228_v36 = vand.u32 4294901760, %v227_v29  ;;  %188 = vmatpush.msra.mxu0 %v4220_v9  ;;  %v4276_v48 = vsub.f32 %v387_v23, %v4255_v32  ;;  %v152_v27 = vld [vmem:[#allocation7] sm:$0xff] }
  0x28   :  { %v192_v38 = vsub.f32 %v4246_v25, %v191_v31  ;;  %v234_v41 = vand.u32 4294901760, %v233_v30  ;;  %v240_v46 = vand.u32 4294901760, %v239_v37  ;;  %v394_v49 = vsel %vm162_vm0, %v150_v44, 0 }
  0x29   :  { %265 = vmatpush.msrb.mxu2 %v219_v12  ;;  %334 = vmatpush.msrb.mxu0 %v220_v19  ;;  %v201_v40 = vand.u32 4294901760, %v200_v35  ;;  %v450_v50 = vand.u32 4294901760, %v4269_v42  ;;  %v4282_v51 = vsub.f32 %v386_v33, %v4271_v43  ;;  %v4286_v52 = vand.u32 4294901760, %v394_v49 }
  0x2a   :  { %3840 = vmatpush.msra.mxu3 %v222_v34  ;;  %223 = vmatpush.msra.mxu1 %v222_v34  ;;  %v193_v45 = vand.u32 4294901760, %v192_v38  ;;  %v456_v53 = vand.u32 4294901760, %v4276_v48  ;;  %v4290_v54 = vsub.f32 %v385_v39, %v4273_v47  ;;  %v4300_v59 = vand.u32 4294901760, %v618_v58  ;;  %v153_v39 = vld [vmem:[#allocation7 + $0x8] sm:$0xff] }
  0x2b   :  { %268 = vmatpush.msrb.mxu2 %v225_v14  ;;  %338 = vmatpush.msrb.mxu0 %v226_v21  ;;  %v451_v56 = vsub.f32 %v4269_v42, %v450_v50  ;;  %v462_v57 = vand.u32 4294901760, %v4282_v51  ;;  %v4305_v60 = vsub.f32 %v394_v49, %v4286_v52  ;;  %v397_v63 = vsel %vm162_vm0, %v151_v55, 0  ;;  %v3859_v55 = vld [vmem:[%s4702_s6] ss:$0 sm:$0xff] }
  0x2c   :  { %202 = vmatmul.f32.vlgmr.msra.gmra.mxu2 %v201_v40  ;;  %3841 = vmatpush.msra.mxu3 %v228_v36  ;;  %v457_v61 = vsub.f32 %v4276_v48, %v456_v53  ;;  %v468_v62 = vand.u32 4294901760, %v4290_v54  ;;  %v4314_v1 = vand.u32 4294901760, %v617_v0  ;;  %v4323_v6 = vsub.f32 %v618_v58, %v4300_v59 }
  0x2d   :  { %271 = vmatpush.msrb.mxu2 %v4230_v15  ;;  %229 = vmatpush.msra.mxu1 %v228_v36  ;;  %v452_v2 = vand.u32 4294901760, %v451_v56  ;;  %v4329_v8 = vand.u32 4294901760, %v616_v7  ;;  %v421_v10 = vand.u32 4294901760, %v4305_v60  ;;  %v624_v33 = vsel %vm162_vm0, %v152_v27, 0 }
  0x2e   :  { %3842 = vmatpush.msra.mxu3 %v234_v41  ;;  %194 = vmatmul.f32.vlgmr.msra.gmra.mxu0 %v193_v45  ;;  %v458_v11 = vand.u32 4294901760, %v457_v61  ;;  %v469_v12 = vsub.f32 %v4290_v54, %v468_v62  ;;  %v4338_v14 = vsub.f32 %v617_v0, %v4314_v1  ;;  %v649_v37 = vand.u32 4294901760, %v624_v33 }
  0x2f   :  { %274 = vmatpush.msrb.mxu2 %v4234_v17  ;;  %235 = vmatpush.msra.mxu1 %v234_v41  ;;  %v680_v17 = vand.u32 4294901760, %v4323_v6  ;;  %v4348_v19 = vsub.f32 %v616_v7, %v4329_v8 }
  0x30   :  { %3843 = vmatpush.msra.mxu3 %v240_v46  ;;  %342 = vmatpush.msrb.mxu0 %v232_v22  ;;  %v470_v21 = vand.u32 4294901760, %v469_v12  ;;  %v686_v23 = vand.u32 4294901760, %v4338_v14  ;;  %v650_v41 = vsub.f32 %v624_v33, %v649_v37 }
  0x31   :  { %412 = vmatpush.msra.mxu2 %v4248_v26  ;;  %247 = vmatmul.f32.vlgmr.msra.gmra.mxu3 %v4226_v13 }
  0x32   :  { %241 = vmatpush.msra.mxu1 %v240_v46  ;;  %299 = vmatpush.msrb.mxu3 %v4214_v3 }
  0x33   :  { %243 = vmatmul.f32.vlgmr.msra.gmra.mxu1 %v4236_v18  ;;  %414 = vmatpush.msra.mxu2 %v4255_v32 }
  0x34   :  { %369 = vmatpush.msrb.mxu1 %v4214_v3  ;;  %277 = vmatmul.f32.vlgmr.msrb.gmra.mxu2 %v4246_v25  ;;  %v463_v3 = vsub.f32 %v4282_v51, %v462_v57  ;;  %v692_v25 = vand.u32 4294901760, %v4348_v19 }
  0x35   :  { %301 = vmatpush.msrb.mxu3 %v4216_v4  ;;  %346 = vmatpush.msrb.mxu0 %v238_v24  ;;  %v681_v24 = vsub.f32 %v4323_v6, %v680_v17 }
  0x36   :  { %371 = vmatpush.msrb.mxu1 %v4216_v4  ;;  %416 = vmatpush.msra.mxu2 %v4271_v43  ;;  %v4327_v4 = vand.u32 4294901760, %v397_v63  ;;  %v464_v16 = vand.u32 4294901760, %v463_v3  ;;  %v693_v36 = vsub.f32 %v4348_v19, %v692_v25 }
  0x37   :  { %303 = vmatpush.msrb.mxu3 %v4218_v5  ;;  %348 = vmatmul.f32.vlgmr.msrb.gmra.mxu0 %v4236_v18  ;;  %v682_v35 = vand.u32 4294901760, %v681_v24 }
  0x38   :  { %373 = vmatpush.msrb.mxu1 %v4218_v5  ;;  %v615_v5 = vld [vmem:[#allocation11] sm:$0xff]  ;;  %418 = vmatpush.msra.mxu2 %v4273_v47  ;;  %v4357_v22 = vsub.f32 %v397_v63, %v4327_v4 }
  0x39   :  { %305 = vmatpush.msrb.mxu3 %v4220_v9  ;;  %v4343_v15 = vand.u32 4294901760, %v615_v5  ;;  %495 = vmatpush.msra.mxu0 %v4269_v42  ;;  %v627_v42 = vsel %vm162_vm0, %v153_v39, 0  ;;  %v3861_v39 = vld [vmem:[%s4704_s8] ss:$0 sm:$0xff]  ;;  %s4107_s8 = smov 112  }
  0x3a   :  { %309 = vmatmul.f32.vlgmr.msrb.gmra.mxu3 %v191_v31  ;;  %375 = vmatpush.msrb.mxu1 %v4220_v9  ;;  %v422_v9 = vsub.f32 %v4305_v60, %v421_v10  ;;  %v429_v30 = vand.u32 4294901760, %v4357_v22  ;;  %v687_v31 = vsub.f32 %v4338_v14, %v686_v23  ;;  %v657_v44 = vand.u32 4294901760, %v627_v42 }
  0x3b   :  { %453 = vmatpush.msra.mxu3 %v452_v2  ;;  %377 = vmatmul.f32.vlgmr.msrb.gmra.mxu1 %v4236_v18  ;;  %v4363_v18 = vsub.f32 %v615_v5, %v4343_v15 }
  0x3c   :  { %282 = vmatmul.f32.gmra.mxu2 %v4240_v20  ;;  %498 = vmatpush.msra.mxu0 %v4276_v48  ;;  %v423_v29 = vand.u32 4294901760, %v422_v9  ;;  %v430_v20 = vsub.f32 %v4357_v22, %v429_v30  ;;  %v658_v45 = vsub.f32 %v627_v42, %v657_v44 }
  0x3d   :  { %459 = vmatpush.msra.mxu3 %v458_v11  ;;  %529 = vmatpush.msra.mxu1 %v4248_v26  ;;  %v698_v34 = vand.u32 4294901760, %v4363_v18 }
  0x3e   :  { %564 = vmatpush.msrb.mxu2 %v450_v50  ;;  %501 = vmatpush.msra.mxu0 %v4282_v51  ;;  %v431_v40 = vand.u32 4294901760, %v430_v20 }
  0x3f   :  { %465 = vmatpush.msra.mxu3 %v464_v16  ;;  %531 = vmatpush.msra.mxu1 %v4255_v32  ;;  %v699_v38 = vsub.f32 %v4363_v18, %v698_v34 }
  0x40   :  { %352 = vmatmul.f32.gmra.mxu0 %v4226_v13  ;;  %568 = vmatpush.msrb.mxu2 %v456_v53 }
  0x41   :  { %471 = vmatpush.msra.mxu3 %v470_v21  ;;  %504 = vmatpush.msra.mxu0 %v4290_v54 }
  0x42   :  { %315 = vmatmul.f32.gmra.mxu3 %v199_v28  ;;  %533 = vmatpush.msra.mxu1 %v4271_v43  ;;  %v688_v28 = vand.u32 4294901760, %v687_v31 }
  0x43   :  { %381 = vmatmul.f32.gmra.mxu1 %v4226_v13  ;;  %572 = vmatpush.msrb.mxu2 %v462_v57  ;;  %v694_v13 = vand.u32 4294901760, %v693_v36 }
  0x44   :  { %424 = vmatmul.f32.vlgmr.msra.gmra.mxu2 %v423_v29  ;;  %535 = vmatpush.msra.mxu1 %v4273_v47 }
  0x45   :  { %576 = vmatpush.msrb.mxu2 %v468_v62  ;;  %599 = vmatpush.msrb.mxu3 %v4248_v26  ;;  %v700_v26 = vand.u32 4294901760, %v699_v38 }
  0x46   :  { %642 = vmatpush.msrb.mxu0 %v4300_v59  ;;  %683 = vmatpush.msrb.mxu1 %v682_v35 }
  0x47   :  { %601 = vmatpush.msrb.mxu3 %v4255_v32  ;;  %725 = vmatpush.msra.mxu2 %v4323_v6  ;;  %v651_v32 = vand.u32 4294901760, %v650_v41 }
  0x48   :  { %507 = vmatmul.f32.vlgmr.msra.gmra.mxu0 %v4305_v60  ;;  %689 = vmatpush.msrb.mxu1 %v688_v28 }
  0x49   :  { %644 = vmatpush.msrb.mxu0 %v4314_v1  ;;  %603 = vmatpush.msrb.mxu3 %v4271_v43  ;;  %v652_v43 = vsub.f32 %v650_v41, %v651_v32 }
  0x4a   :  { %473 = vmatmul.f32.vlgmr.msra.gmra.mxu3 %v4286_v52  ;;  %695 = vmatpush.msrb.mxu1 %v694_v13 }
  0x4b   :  { %539 = vmatmul.f32.vlgmr.msra.gmra.mxu1 %v421_v10  ;;  %646 = vmatpush.msrb.mxu0 %v4329_v8  ;;  %v653_v46 = vand.u32 4294901760, %v652_v43 }
  0x4c   :  { %432 = vmatmul.f32.gmra.mxu2 %v431_v40  ;;  %605 = vmatpush.msrb.mxu3 %v4273_v47  ;;  %v659_v47 = vand.u32 4294901760, %v658_v45 }
  0x4d   :  { %648 = vmatpush.msrb.mxu0 %v4343_v15  ;;  %701 = vmatpush.msrb.mxu1 %v700_v26 }
  0x4e   :  { %728 = vmatpush.msra.mxu2 %v4338_v14  ;;  %759 = vmatpush.msra.mxu3 %v4300_v59  ;;  %v660_v48 = vsub.f32 %v658_v45, %v659_v47 }
  0x4f   :  { %794 = vmatpush.msra.mxu0 %v680_v17  ;;  %829 = vmatpush.msra.mxu1 %v4300_v59 }
  0x50   :  { %512 = vmatmul.f32.gmra.mxu0 %v4357_v22  ;;  %731 = vmatpush.msra.mxu2 %v4348_v19  ;;  %v661_v49 = vand.u32 4294901760, %v660_v48 }
  0x51   :  { %798 = vmatpush.msra.mxu0 %v686_v23  ;;  %761 = vmatpush.msra.mxu3 %v4314_v1 }
  0x52   :  { %477 = vmatmul.f32.gmra.mxu3 %v4327_v4  ;;  %734 = vmatpush.msra.mxu2 %v4363_v18 }
  0x53   :  { %545 = vmatmul.f32.gmra.mxu1 %v429_v30  ;;  %802 = vmatpush.msra.mxu0 %v692_v25 }
  0x54   :  { %578 = vmatmul.f32.vlgmr.msrb.gmra.mxu2 %v4286_v52  ;;  %763 = vmatpush.msra.mxu3 %v4329_v8 }
  0x55   :  { %831 = vmatpush.msra.mxu1 %v4314_v1  ;;  %806 = vmatpush.msra.mxu0 %v698_v34 }
  0x56   :  { %765 = vmatpush.msra.mxu3 %v4343_v15 }
  0x57   :  { %833 = vmatpush.msra.mxu1 %v4329_v8  ;;  %v3860_v8 = vld [vmem:[%s4703_s7] ss:$0 sm:$0xff] }
  0x58   :  { %654 = vmatmul.f32.vlgmr.msrb.gmra.mxu0 %v653_v46 }
  0x59   :  { %835 = vmatpush.msra.mxu1 %v4343_v15 }
  0x5a   :  { %607 = vmatmul.f32.vlgmr.msrb.gmra.mxu3 %v4286_v52 }
  0x5b   :  { %703 = vmatmul.f32.vlgmr.msrb.gmra.mxu1 %v649_v37 }
  0x5c   :  { %582 = vmatmul.f32.gmra.mxu2 %v4327_v4 }
  0x60   :  { %662 = vmatmul.f32.gmra.mxu0 %v661_v49 }
  0x62   :  { %611 = vmatmul.f32.gmra.mxu3 %v4327_v4 }
  0x63   :  { %707 = vmatmul.f32.gmra.mxu1 %v657_v44 }
  0x64   :  { %737 = vmatmul.f32.vlgmr.msra.gmra.mxu2 %v650_v41 }
  0x68   :  { %808 = vmatmul.f32.vlgmr.msra.gmra.mxu0 %v649_v37 }
  0x6a   :  { %769 = vmatmul.f32.vlgmr.msra.gmra.mxu3 %v651_v32 }
  0x6b   :  { %837 = vmatmul.f32.vlgmr.msra.gmra.mxu1 %v649_v37 }
  0x6c   :  { %742 = vmatmul.f32.gmra.mxu2 %v658_v45 }
  0x70   :  { %812 = vmatmul.f32.gmra.mxu0 %v657_v44 }
  0x72   :  { %775 = vmatmul.f32.gmra.mxu3 %v659_v47 }
  0x73   :  { %841 = vmatmul.f32.gmra.mxu1 %v657_v44 }
  0xab   :  { %v195_v50 = vpop.f32.mrf.mxu0 }
  0xac   :  { %v196_v57 = vadd.f32 %v3859_v55, %v195_v50 }
  0xaf   :  { %v203_v51 = vpop.f32.mrf.mxu2 }
  0xb0   :  { %v244_v52 = vpop.f32.mrf.mxu1  ;;  %v204_v10 = vadd.f32 %v3859_v55, %v203_v51 }
  0xb1   :  { %v245_v59 = vadd.f32 %v244_v52, %v196_v57 }
  0xb4   :  { %v248_v53 = vpop.f32.mrf.mxu3  ;;  %v349_v54 = vpop.f32.mrf.mxu0 }
  0xb5   :  { %v249_v16 = vadd.f32 %v248_v53, %v204_v10 }
  0xb7   :  { %v278_v56 = vpop.f32.mrf.mxu2 }
  0xb8   :  { %v378_v58 = vpop.f32.mrf.mxu1  ;;  %v279_v63 = vadd.f32 %v278_v56, %v245_v59 }
  0xbd   :  { %v310_v60 = vpop.f32.mrf.mxu3  ;;  %v353_v61 = vpop.f32.mrf.mxu0 }
  0xbe   :  { %v311_v1 = vadd.f32 %v310_v60, %v279_v63 }
  0xbf   :  { %v283_v62 = vpop.f32.mrf.mxu2 }
  0xc0   :  { %v382_v0 = vpop.f32.mrf.mxu1  ;;  %v350_v7 = vadd.f32 %v349_v54, %v311_v1  ;;  %v284_v21 = vadd.f32 %v283_v62, %v249_v16 }
  0xc2   :  { %v4440_v11 = vadd.f32 %v378_v58, %v350_v7 }
  0xc4   :  { %v847_v17 = vsel %vm845_vm1, %v4440_v11, 0 }
  0xc5   :  { %v316_v2 = vpop.f32.mrf.mxu3  ;;  %v508_v3 = vpop.f32.mrf.mxu0  ;;  %v4444_v22 = vand.u32 4294901760, %v847_v17 }
  0xc6   :  { %v317_v23 = vadd.f32 %v316_v2, %v284_v21 }
  0xc7   :  { %v425_v6 = vpop.f32.mrf.mxu2  ;;  %v4447_v29 = vsub.f32 %v847_v17, %v4444_v22 }
  0xc8   :  { %v540_v4 = vpop.f32.mrf.mxu1  ;;  %v426_v14 = vadd.f32 %v3860_v8, %v425_v6  ;;  %v354_v31 = vadd.f32 %v353_v61, %v317_v23 }
  0xc9   :  { %v871_v20 = vand.u32 4294901760, %v4447_v29 }
  0xca   :  { %v4450_v28 = vadd.f32 %v382_v0, %v354_v31 }
  0xcb   :  { %v872_v26 = vsub.f32 %v4447_v29, %v871_v20 }
  0xcc   :  { %v999_v42 = vsel %vm845_vm1, %v4450_v28, 0 }
  0xcd   :  { %v474_v12 = vpop.f32.mrf.mxu3  ;;  %v513_v5 = vpop.f32.mrf.mxu0  ;;  %v4466_v48 = vand.u32 4294901760, %v999_v42  ;;  %v873_v50 = vand.u32 4294901760, %v872_v26 }
  0xce   :  { %v475_v9 = vadd.f32 %v474_v12, %v426_v14 }
  0xcf   :  { %v433_v15 = vpop.f32.mrf.mxu2  ;;  %v1022_v56 = vsub.f32 %v999_v42, %v4466_v48 }
  0xd0   :  { %v546_v19 = vpop.f32.mrf.mxu1  ;;  %v434_v24 = vadd.f32 %v3860_v8, %v433_v15  ;;  %v509_v25 = vadd.f32 %v508_v3, %v475_v9 }
  0xd1   :  { %v1023_v1 = vand.u32 4294901760, %v1022_v56 }
  0xd2   :  { %v541_v34 = vadd.f32 %v540_v4, %v509_v25 }
  0xd3   :  { %v1024_v14 = vsub.f32 %v1022_v56, %v1023_v1 }
  0xd5   :  { %v478_v18 = vpop.f32.mrf.mxu3  ;;  %v655_v27 = vpop.f32.mrf.mxu0  ;;  %v1025_v17 = vand.u32 4294901760, %v1024_v14 }
  0xd6   :  { %v479_v35 = vadd.f32 %v478_v18, %v434_v24  ;;  %v656_v45 = vadd.f32 %v3861_v39, %v655_v27 }
  0xd7   :  { %v579_v30 = vpop.f32.mrf.mxu2 }
  0xd8   :  { %v704_v33 = vpop.f32.mrf.mxu1  ;;  %v580_v36 = vadd.f32 %v579_v30, %v541_v34  ;;  %v514_v38 = vadd.f32 %v513_v5, %v479_v35 }
  0xd9   :  { %v705_v53 = vadd.f32 %v704_v33, %v656_v45 }
  0xda   :  { %v547_v43 = vadd.f32 %v546_v19, %v514_v38 }
  0xdd   :  { %v608_v37 = vpop.f32.mrf.mxu3  ;;  %v663_v44 = vpop.f32.mrf.mxu0 }
  0xde   :  { %v4452_v13 = vadd.f32 %v608_v37, %v580_v36  ;;  %v664_v61 = vadd.f32 %v3861_v39, %v663_v44 }
  0xdf   :  { %v583_v40 = vpop.f32.mrf.mxu2 }
  0xe0   :  { %1516 = vrot.lane.b32.xlu0 %v4452_v13, %s4106_s13  ;;  %v850_v41 = vsel %vm845_vm1, %v4452_v13, 0  ;;  %v708_v47 = vpop.f32.mrf.mxu1  ;;  %v584_v49 = vadd.f32 %v583_v40, %v547_v43 }
  0xe1   :  { %v867_v32 = vand.u32 4294901760, %v850_v41  ;;  %v709_v7 = vadd.f32 %v708_v47, %v664_v61 }
  0xe3   :  { %868 = vmatpush.xpose.msrb.mxu2 %v867_v32  ;;  %992 = vmatpush.xpose.msrb.mxu1 %v867_v32  ;;  %v894_v46 = vsub.f32 %v850_v41, %v867_v32 }
  0xe5   :  { %v612_v51 = vpop.f32.mrf.mxu3  ;;  %v895_v52 = vand.u32 4294901760, %v894_v46  ;;  %v809_v0 = vpop.f32.mrf.mxu0 }
  0xe6   :  { %v4468_v54 = vadd.f32 %v612_v51, %v584_v49  ;;  %874 = vmatmul.f32.vlgmr.msrb.gmra.mxu2 %v873_v50  ;;  %994 = vmatmul.f32.vlgmr.msrb.gmra.mxu1 %v4444_v22 }
  0xe7   :  { %921 = vmatpush.xpose.msra.mxu2 %v894_v46  ;;  %970 = vmatpush.xpose.msrb.mxu0 %v895_v52  ;;  %v896_v55 = vsub.f32 %v894_v46, %v895_v52  ;;  %v738_v57 = vpop.f32.mrf.mxu2 }
  0xe8   :  { %1670 = vrot.lane.b32.xlu1 %v4468_v54, %s4106_s13  ;;  %1514 = vrot.lane.b32.xlu0 %v4440_v11, %s4106_s13  ;;  %v1002_v58 = vsel %vm845_vm1, %v4468_v54, 0  ;;  %v739_v62 = vadd.f32 %v738_v57, %v705_v53  ;;  %v838_v6 = vpop.f32.mrf.mxu1 }
  0xe9   :  { %v897_v59 = vand.u32 4294901760, %v896_v55  ;;  %v1019_v60 = vand.u32 4294901760, %v1002_v58 }
  0xea   :  { %972 = vmatmul.f32.vlgmr.msrb.gmra.mxu0 %v4444_v22 }
  0xeb   :  { %898 = vmatpush.xpose.msrb.mxu3 %v897_v59  ;;  %1020 = vmatpush.xpose.msrb.mxu2 %v1019_v60  ;;  %v1046_v63 = vsub.f32 %v1002_v58, %v1019_v60 }
  0xec   :  { %1096 = vmatpush.xpose.msra.mxu1 %v1019_v60 }
  0xed   :  { %v770_v2 = vpop.f32.mrf.mxu3  ;;  %1073 = vmatpush.xpose.msra.mxu0 %v1046_v63  ;;  %v1047_v3 = vand.u32 4294901760, %v1046_v63  ;;  %v813_v21 = vpop.f32.mrf.mxu0 }
  0xee   :  { %v771_v4 = vadd.f32 %v770_v2, %v739_v62  ;;  %900 = vmatmul.f32.vlgmr.msrb.gmra.mxu3 %v4444_v22  ;;  %924 = vmatmul.f32.vlgmr.msra.gmra.mxu2 %v4447_v29 }
  0xef   :  { %944 = vmatpush.xpose.msra.mxu3 %v867_v32  ;;  %1100 = vmatmul.f32.vlgmr.msra.gmra.mxu1 %v1023_v1  ;;  %v1048_v8 = vsub.f32 %v1046_v63, %v1047_v3  ;;  %v743_v12 = vpop.f32.mrf.mxu2 }
  0xf0   :  { %1122 = vmatpush.xpose.msra.mxu2 %v1047_v3  ;;  %v810_v10 = vadd.f32 %v809_v0, %v771_v4  ;;  %1668 = vrot.lane.b32.xlu1 %v4450_v28, %s4106_s13  ;;  %v744_v16 = vadd.f32 %v743_v12, %v709_v7  ;;  %v842_v23 = vpop.f32.mrf.mxu1 }
  0xf1   :  { %2196 = vrot.lane.b32.xlu0 %v4452_v13, %s4107_s8  ;;  %v1049_v5 = vand.u32 4294901760, %v1048_v8 }
  0xf2   :  { %v839_v15 = vadd.f32 %v838_v6, %v810_v10  ;;  %1076 = vmatmul.f32.vlgmr.msra.gmra.mxu0 %v1022_v56 }
  0xf3   :  { %1050 = vmatpush.xpose.msrb.mxu3 %v1049_v5 }
  0xf4   :  { %1889 = vrot.lane.b32.xlu2 %v839_v15, %s4106_s13  ;;  %v1234_v19 = vand.u32 4294901760, %v839_v15 }
  0xf5   :  { %v776_v9 = vpop.f32.mrf.mxu3 }
  0xf6   :  { %v777_v22 = vadd.f32 %v776_v9, %v744_v16  ;;  %948 = vmatmul.f32.vlgmr.msra.gmra.mxu3 %v871_v20  ;;  %1026 = vmatmul.f32.vlgmr.msrb.gmra.mxu2 %v1025_v17  ;;  %v1261_v25 = vsub.f32 %v839_v15, %v1234_v19 }
  0xf7   :  { %1144 = vmatpush.xpose.msra.mxu3 %v1019_v60  ;;  %1235 = vmatpush.msrb.mxu0 %v1234_v19 }
  0xf8   :  { %v814_v18 = vadd.f32 %v813_v21, %v777_v22  ;;  %2194 = vrot.lane.b32.xlu1 %v4440_v11, %s4107_s8  ;;  %v1262_v27 = vand.u32 4294901760, %v1261_v25  ;;  %1288 = vmatpush.msrb.mxu2 %v1261_v25 }
  0xf9   :  { %2348 = vrot.lane.b32.xlu0 %v4450_v28, %s4107_s8 }
  0xfa   :  { %v843_v24 = vadd.f32 %v842_v23, %v814_v18  ;;  %v1263_v29 = vsub.f32 %v1261_v25, %v1262_v27  ;;  %1337 = vmatpush.msra.mxu0 %v1262_v27 }
  0xfc   :  { %2042 = vrot.lane.b32.xlu2 %v843_v24, %s4106_s13  ;;  %v1264_v30 = vand.u32 4294901760, %v1263_v29  ;;  %v4504_v31 = vand.u32 4294901760, %v843_v24 }
  0xfe   :  { %1052 = vmatmul.f32.vlgmr.msrb.gmra.mxu3 %v4466_v48  ;;  %1124 = vmatmul.f32.vlgmr.msra.gmra.mxu2 %v4466_v48 }
  0xff   :  { %1311 = vmatpush.msrb.mxu3 %v1234_v19  ;;  %1265 = vmatpush.msrb.mxu1 %v1264_v30 }
 0x100   :  { %2568 = vrot.lane.b32.xlu1 %v839_v15, %s4107_s8  ;;  %1384 = vmatpush.msra.mxu2 %v4504_v31 }
 0x101   :  { %2874 = vrot.lane.b32.xlu0 %v4452_v13, %s4108_s14  ;;  %1359 = vmatpush.msra.mxu1 %v1234_v19 }
 0x104   :  { %2350 = vrot.lane.b32.xlu2 %v4468_v54, %s4107_s8 }
 0x106   :  { %1146 = vmatmul.f32.vlgmr.msra.gmra.mxu3 %v4466_v48 }
 0x108   :  { %2872 = vrot.lane.b32.xlu1 %v4440_v11, %s4108_s14  ;;  %v4508_v11 = vsub.f32 %v843_v24, %v4504_v31 }
 0x109   :  { %3026 = vrot.lane.b32.xlu0 %v4450_v28, %s4108_s14 }
 0x10a   :  { %v1411_v33 = vand.u32 4294901760, %v4508_v11 }
 0x10c   :  { %2720 = vrot.lane.b32.xlu2 %v843_v24, %s4107_s8  ;;  %v1412_v34 = vsub.f32 %v4508_v11, %v1411_v33 }
 0x10e   :  { %v1413_v35 = vand.u32 4294901760, %v1412_v34 }
 0x110   :  { %3246 = vrot.lane.b32.xlu1 %v839_v15, %s4108_s14  ;;  %1414 = vmatpush.msra.mxu3 %v1413_v35 }
 0x114   :  { %3028 = vrot.lane.b32.xlu2 %v4468_v54, %s4108_s14 }
 0x11c   :  { %3398 = vrot.lane.b32.xlu2 %v843_v24, %s4108_s14 }
 0x152   :  { %v1517_v29 = vpop.permute.xlu0 %1516 }
 0x163   :  { %v995_v41 = vpop.f32.mrf.mxu1 }
 0x167   :  { %v973_v13 = vpop.f32.mrf.mxu0 }
 0x169   :  { %v875_v36 = vpop.f32.mrf.mxu2 }
 0x16c   :  { %v1101_v50 = vpop.f32.mrf.mxu1 }
 0x16f   :  { %v1077_v47 = vpop.f32.mrf.mxu0 }
 0x171   :  { %v901_v20 = vpop.f32.mrf.mxu3  ;;  %v925_v28 = vpop.f32.mrf.mxu2 }
 0x172   :  { %v902_v37 = vadd.f32 %v901_v20, %v875_v36  ;;  %v1520_v36 = vsel %vm845_vm1, %v1517_v29, 0 }
 0x174   :  { %v926_v38 = vadd.f32 %v925_v28, %v902_v37 }
 0x179   :  { %v949_v39 = vpop.f32.mrf.mxu3  ;;  %v1027_v42 = vpop.f32.mrf.mxu2 }
 0x17a   :  { %v950_v40 = vadd.f32 %v949_v39, %v926_v38 }
 0x17c   :  { %v974_v26 = vadd.f32 %v973_v13, %v950_v40  ;;  %v4522_v13 = vand.u32 4294901760, %v1520_v36 }
 0x17e   :  { %v996_v32 = vadd.f32 %v995_v41, %v974_v26 }
 0x180   :  { %v1150_v44 = vmul.f32 0.35355338, %v996_v32 }
 0x181   :  { %v1053_v43 = vpop.f32.mrf.mxu3  ;;  %v1125_v54 = vpop.f32.mrf.mxu2 }
 0x182   :  { %v1152_v45 = vsel %vm845_vm1, %v1150_v44, -inf  ;;  %v1054_v46 = vadd.f32 %v1053_v43, %v1027_v42  ;;  %v4525_v42 = vsub.f32 %v1520_v36, %v4522_v13  ;;  %v1671_v43 = vpop.permute.xlu1 %1670 }
 0x183   :  { %v1153_v48 = vrot.slane %v1152_v45, 4 }
 0x184   :  { %v1078_v49 = vadd.f32 %v1077_v47, %v1054_v46 }
 0x185   :  { %v1154_v51 = vmax.f32 %v1152_v45, %v1153_v48  ;;  %v1565_v48 = vand.u32 4294901760, %v4525_v42 }
 0x186   :  { %v1102_v52 = vadd.f32 %v1101_v50, %v1078_v49  ;;  %v1674_v50 = vsel %vm845_vm1, %v1671_v43, 0 }
 0x187   :  { %v1155_v53 = vrot.slane %v1154_v51, 2 }
 0x188   :  { %v1126_v55 = vadd.f32 %v1125_v54, %v1102_v52 }
 0x189   :  { %v1156_v56 = vmax.f32 %v1154_v51, %v1155_v53  ;;  %v1147_v57 = vpop.f32.mrf.mxu3 }
 0x18a   :  { %v1148_v58 = vadd.f32 %v1147_v57, %v1126_v55  ;;  %v1691_v57 = vand.u32 4294901760, %v1674_v50 }
 0x18b   :  { %v1157_v59 = vrot.slane %v1156_v56, 1 }
 0x18c   :  { %v1151_v60 = vmul.f32 0.35355338, %v1148_v58 }
 0x18d   :  { %v1158_v61 = vmax.f32 %v1156_v56, %v1157_v59  ;;  %v1566_v56 = vsub.f32 %v4525_v42, %v1565_v48 }
 0x18e   :  { %v1159_v62 = vsel %vm845_vm1, %v1151_v60, -inf }
 0x18f   :  { %v1166_v63 = vsub.f32 %v1150_v44, %v1158_v61  ;;  %v1160_v0 = vrot.slane %v1159_v62, 4 }
 0x191   :  { %v1168_v1 = vmul.f32 1.442695, %v1166_v63  ;;  %v1161_v2 = vmax.f32 %v1159_v62, %v1160_v0  ;;  %v1567_v0 = vand.u32 4294901760, %v1566_v56 }
 0x193   :  { %3863 = vpow2.f32 %v1168_v1  ;;  %v1162_v3 = vrot.slane %v1161_v2, 2  ;;  %v1718_v1 = vsub.f32 %v1674_v50, %v1691_v57 }
 0x195   :  { %v1163_v6 = vmax.f32 %v1161_v2, %v1162_v3  ;;  %v1515_v3 = vpop.permute.xlu0 %1514 }
 0x197   :  { %v1164_v7 = vrot.slane %v1163_v6, 1 }
 0x199   :  { %v3864_v4 = vpop.eup %3863  ;;  %v1165_v8 = vmax.f32 %v1163_v6, %v1164_v7  ;;  %v1719_v7 = vand.u32 4294901760, %v1718_v1 }
 0x19a   :  { %v1172_v10 = vsel %vm845_vm1, %v3864_v4, 0.0 }
 0x19b   :  { %v1173_v12 = vrot.slane %v1172_v10, 4  ;;  %v1167_v14 = vsub.f32 %v1151_v60, %v1165_v8  ;;  %v1890_v8 = vpop.permute.xlu2 %1889 }
 0x19d   :  { %v1174_v5 = vadd.f32 %v1173_v12, %v1172_v10  ;;  %v1170_v15 = vmul.f32 1.442695, %v1167_v14  ;;  %v1910_v14 = vand.u32 4294901760, %v1890_v8 }
 0x19f   :  { %v1175_v16 = vrot.slane %v1174_v5, 2  ;;  %3865 = vpow2.f32 %v1170_v15 }
 0x1a1   :  { %v1176_v17 = vadd.f32 %v1175_v16, %v1174_v5  ;;  %v1720_v5 = vsub.f32 %v1718_v1, %v1719_v7 }
 0x1a3   :  { %v1177_v19 = vrot.slane %v1176_v17, 1 }
 0x1a5   :  { %v4517_v9 = vpop.eup %3865  ;;  %v1178_v21 = vadd.f32 %v1177_v19, %v1176_v17  ;;  %v1937_v17 = vsub.f32 %v1890_v8, %v1910_v14  ;;  %v1721_v19 = vand.u32 4294901760, %v1720_v5 }
 0x1a6   :  { %v1179_v22 = vsel %vm845_vm1, %v4517_v9, 0.0 }
 0x1a7   :  { %3867 = vrcp.f32 %v1178_v21  ;;  %v1180_v23 = vrot.slane %v1179_v22, 4  ;;  %v1197_v28 = vand.u32 2147483648, %v1178_v21  ;;  %v1195_v38 = vand.u32 2147483647, %v1178_v21 }
 0x1a8   :  { %vm1191_vm3 = vweird.f32 %v1178_v21 }
 0x1a9   :  { %v1181_v18 = vadd.f32 %v1180_v23, %v1179_v22  ;;  %v1198_v40 = vor.u32 1.1754944e-38, %v1197_v28  ;;  %vm1196_vm5 = vcmp.eq.f32.partialorder %v1195_v38, 8.507059e+37  ;;  %v1938_v22 = vand.u32 4294901760, %v1937_v17 }
 0x1ab   :  { %v1182_v24 = vrot.slane %v1181_v18, 2 }
 0x1ad   :  { %v3868_v25 = vpop.eup %3867  ;;  %v1183_v27 = vadd.f32 %v1182_v24, %v1181_v18  ;;  %v2043_v18 = vpop.permute.xlu2 %2042 }
 0x1ae   :  { %v1187_v30 = vmul.f32 %v3868_v25, %v1178_v21  ;;  %vm1192_vm2 = vweird.f32 %v3868_v25  ;;  %v4548_v29 = vand.u32 4294901760, %v2043_v18 }
 0x1af   :  { %v1184_v34 = vrot.slane %v1183_v27, 1  ;;  %vm1193_vm4 = vmor %vm1191_vm3, %vm1192_vm2 }
 0x1b0   :  { %v1188_v35 = vsub.f32 1.0, %v1187_v30  ;;  %v4551_v36 = vsub.f32 %v2043_v18, %v4548_v29 }
 0x1b1   :  { %v1185_v20 = vadd.f32 %v1184_v34, %v1183_v27  ;;  %v1939_v27 = vsub.f32 %v1937_v17, %v1938_v22 }
 0x1b2   :  { %v1189_v37 = vmul.f32 %v3868_v25, %v1188_v35  ;;  %v2091_v28 = vand.u32 4294901760, %v4551_v36 }
 0x1b3   :  { %3869 = vrcp.f32 %v1185_v20  ;;  %v1212_v52 = vand.u32 2147483648, %v1185_v20  ;;  %v1210_v54 = vand.u32 2147483647, %v1185_v20  ;;  %vm1206_vm7 = vweird.f32 %v1185_v20 }
 0x1b4   :  { %v1190_v39 = vadd.f32 %v3868_v25, %v1189_v37  ;;  %v1940_v35 = vand.u32 4294901760, %v1939_v27  ;;  %v2092_v38 = vsub.f32 %v4551_v36, %v2091_v28 }
 0x1b5   :  { %v1213_v60 = vor.u32 1.1754944e-38, %v1212_v52  ;;  %vm1211_vm9 = vcmp.eq.f32.partialorder %v1210_v54, 8.507059e+37 }
 0x1b6   :  { %v1194_v41 = vsel %vm1193_vm4, %v3868_v25, %v1190_v39  ;;  %v2093_v39 = vand.u32 4294901760, %v2092_v38 }
 0x1b7   :  { %v1199_v26 = vsel %vm1196_vm5, %v1198_v40, %v1194_v41 }
 0x1b8   :  { %v1200_v32 = vmul.f32 %v3864_v4, %v1199_v26 }
 0x1b9   :  { %v3870_v44 = vpop.eup %3869 }
 0x1ba   :  { %v1217_v45 = vsel %vm845_vm1, %v1200_v32, 0  ;;  %v1202_v46 = vmul.f32 %v3870_v44, %v1185_v20  ;;  %vm1207_vm6 = vweird.f32 %v3870_v44 }
 0x1bb   :  { %v1236_v47 = vand.u32 4294901760, %v1217_v45  ;;  %vm1208_vm8 = vmor %vm1206_vm7, %vm1207_vm6 }
 0x1bc   :  { %v1203_v49 = vsub.f32 1.0, %v1202_v46 }
 0x1bd   :  { %1267 = vmatmul.f32.vlgmr.msrb.gmra.mxu1 %v1236_v47  ;;  %v1237_v51 = vsub.f32 %v1217_v45, %v1236_v47 }
 0x1be   :  { %1460 = vmatpush.msrb.mxu1 %v4504_v31  ;;  %v1204_v53 = vmul.f32 %v3870_v44, %v1203_v49 }
 0x1bf   :  { %1291 = vmatmul.f32.vlgmr.msrb.gmra.mxu2 %v1237_v51  ;;  %v1238_v55 = vand.u32 4294901760, %v1237_v51 }
 0x1c0   :  { %1486 = vmatpush.msrb.mxu2 %v1411_v33  ;;  %v1205_v58 = vadd.f32 %v3870_v44, %v1204_v53 }
 0x1c1   :  { %1315 = vmatmul.f32.vlgmr.msrb.gmra.mxu3 %v1238_v55  ;;  %v1239_v59 = vsub.f32 %v1237_v51, %v1238_v55 }
 0x1c2   :  { %1508 = vmatpush.msrb.mxu3 %v4504_v31  ;;  %v1209_v61 = vsel %vm1208_vm8, %v3870_v44, %v1205_v58  ;;  %v1518_v31 = vsel %vm845_vm1, %v1515_v3, 0 }
 0x1c3   :  { %v1240_v62 = vand.u32 4294901760, %v1239_v59  ;;  %v1214_v63 = vsel %vm1211_vm9, %v1213_v60, %v1209_v61  ;;  %v1539_v10 = vand.u32 4294901760, %v1518_v31 }
 0x1c4   :  { %v1215_v2 = vmul.f32 %v4517_v9, %v1214_v63  ;;  %v1669_v9 = vpop.permute.xlu1 %1668 }
 0x1c5   :  { %1241 = vmatmul.f32.vlgmr.msrb.gmra.mxu0 %v1240_v62  ;;  %1361 = vmatmul.f32.vlgmr.msra.gmra.mxu1 %v1236_v47  ;;  %v1672_v23 = vsel %vm845_vm1, %v1669_v9, 0 }
 0x1c6   :  { %1437 = vmatpush.msrb.mxu0 %v4508_v11  ;;  %1568 = vmatpush.xpose.msra.mxu1 %v1567_v0  ;;  %v1366_v33 = vsel %vm845_vm1, %v1215_v2, 0  ;;  %v1540_v11 = vsub.f32 %v1518_v31, %v1539_v10  ;;  %v1693_v25 = vand.u32 4294901760, %v1672_v23 }
 0x1c7   :  { %v1385_v6 = vand.u32 4294901760, %v1366_v33 }
 0x1c8   :  { %v1541_v21 = vand.u32 4294901760, %v1540_v11  ;;  %v1694_v34 = vsub.f32 %v1672_v23, %v1693_v25 }
 0x1c9   :  { %v1386_v4 = vsub.f32 %v1366_v33, %v1385_v6  ;;  %1416 = vmatmul.f32.vlgmr.msra.gmra.mxu3 %v1385_v6 }
 0x1ca   :  { %1614 = vmatpush.xpose.msra.mxu3 %v4522_v13  ;;  %v1542_v24 = vsub.f32 %v1540_v11, %v1541_v21  ;;  %v1695_v20 = vand.u32 4294901760, %v1694_v34 }
 0x1cb   :  { %v1387_v12 = vand.u32 4294901760, %v1386_v4 }
 0x1cc   :  { %v1543_v30 = vand.u32 4294901760, %v1542_v24  ;;  %v1696_v37 = vsub.f32 %v1694_v34, %v1695_v20 }
 0x1cd   :  { %1339 = vmatmul.f32.vlgmr.msra.gmra.mxu0 %v1236_v47  ;;  %1464 = vmatmul.f32.vlgmr.msrb.gmra.mxu1 %v1387_v12  ;;  %v1388_v15 = vsub.f32 %v1386_v4, %v1387_v12 }
 0x1ce   :  { %1538 = vmatpush.xpose.msra.mxu0 %v4522_v13  ;;  %1662 = vmatpush.xpose.msrb.mxu1 %v4522_v13  ;;  %v1697_v13 = vand.u32 4294901760, %v1696_v37 }
 0x1cf   :  { %v1389_v16 = vand.u32 4294901760, %v1388_v15 }
 0x1d1   :  { %1390 = vmatmul.f32.vlgmr.msra.gmra.mxu2 %v1389_v16  ;;  %1510 = vmatmul.f32.vlgmr.msrb.gmra.mxu3 %v1385_v6 }
 0x1d2   :  { %1591 = vmatpush.xpose.msra.mxu2 %v4525_v42  ;;  %1722 = vmatpush.xpose.msrb.mxu3 %v1721_v19 }
 0x1d5   :  { %1440 = vmatmul.f32.vlgmr.msrb.gmra.mxu0 %v1386_v4  ;;  %1570 = vmatmul.f32.vlgmr.msra.gmra.mxu1 %v1539_v10 }
 0x1d6   :  { %1640 = vmatpush.xpose.msrb.mxu0 %v1565_v48  ;;  %1768 = vmatpush.xpose.msra.mxu1 %v1691_v57 }
 0x1d9   :  { %1488 = vmatmul.f32.vlgmr.msrb.gmra.mxu2 %v1385_v6  ;;  %1618 = vmatmul.f32.vlgmr.msra.gmra.mxu3 %v1541_v21 }
 0x1da   :  { %1692 = vmatpush.xpose.msrb.mxu2 %v1691_v57  ;;  %1816 = vmatpush.xpose.msra.mxu3 %v1691_v57 }
 0x1dd   :  { %1544 = vmatmul.f32.vlgmr.msra.gmra.mxu0 %v1543_v30  ;;  %1664 = vmatmul.f32.vlgmr.msrb.gmra.mxu1 %v1539_v10 }
 0x1de   :  { %1745 = vmatpush.xpose.msra.mxu0 %v1718_v1  ;;  %1941 = vmatpush.msrb.mxu1 %v1940_v35 }
 0x1e1   :  { %1594 = vmatmul.f32.vlgmr.msra.gmra.mxu2 %v1540_v11  ;;  %1724 = vmatmul.f32.vlgmr.msrb.gmra.mxu3 %v1693_v25 }
 0x1e2   :  { %1794 = vmatpush.xpose.msra.mxu2 %v1719_v7  ;;  %1987 = vmatpush.msrb.mxu3 %v1910_v14 }
 0x1e5   :  { %1642 = vmatmul.f32.vlgmr.msrb.gmra.mxu0 %v1539_v10  ;;  %1772 = vmatmul.f32.vlgmr.msra.gmra.mxu1 %v1695_v20 }
 0x1e6   :  { %1911 = vmatpush.msrb.mxu0 %v1910_v14  ;;  %2035 = vmatpush.msra.mxu1 %v1910_v14 }
 0x1e9   :  { %1698 = vmatmul.f32.vlgmr.msrb.gmra.mxu2 %v1697_v13  ;;  %1818 = vmatmul.f32.vlgmr.msra.gmra.mxu3 %v1693_v25 }
 0x1ea   :  { %1964 = vmatpush.msrb.mxu2 %v1937_v17  ;;  %2094 = vmatpush.msra.mxu3 %v2093_v39 }
 0x1ed   :  { %1748 = vmatmul.f32.vlgmr.msra.gmra.mxu0 %v1694_v34 }
 0x1ee   :  { %2013 = vmatpush.msra.mxu0 %v1938_v22 }
 0x1f1   :  { %1796 = vmatmul.f32.vlgmr.msra.gmra.mxu2 %v1693_v25 }
 0x1f2   :  { %2064 = vmatpush.msra.mxu2 %v4548_v29 }
 0x23a   :  { %v1268_v40 = vpop.f32.mrf.mxu1 }
 0x242   :  { %v1242_v41 = vpop.f32.mrf.mxu0  ;;  %v1292_v42 = vpop.f32.mrf.mxu2 }
 0x243   :  { %v1269_v26 = vadd.f32 %v1268_v40, %v1242_v41  ;;  %v1362_v45 = vpop.f32.mrf.mxu1 }
 0x244   :  { %v1316_v32 = vpop.f32.mrf.mxu3 }
 0x245   :  { %v1293_v44 = vadd.f32 %v1292_v42, %v1269_v26 }
 0x247   :  { %v1317_v43 = vadd.f32 %v1316_v32, %v1293_v44 }
 0x24a   :  { %v1340_v46 = vpop.f32.mrf.mxu0 }
 0x24b   :  { %v1341_v47 = vadd.f32 %v1340_v46, %v1317_v43  ;;  %v1465_v51 = vpop.f32.mrf.mxu1 }
 0x24c   :  { %v1417_v49 = vpop.f32.mrf.mxu3 }
 0x24d   :  { %v4558_v48 = vadd.f32 %v1362_v45, %v1341_v47 }
 0x252   :  { %v1441_v50 = vpop.f32.mrf.mxu0 }
 0x253   :  { %v1571_v60 = vpop.f32.mrf.mxu1 }
 0x254   :  { %v1391_v52 = vpop.f32.mrf.mxu2  ;;  %v1511_v55 = vpop.f32.mrf.mxu3 }
 0x255   :  { %v1418_v53 = vadd.f32 %v1417_v49, %v1391_v52 }
 0x257   :  { %v1442_v54 = vadd.f32 %v1441_v50, %v1418_v53 }
 0x259   :  { %v1466_v56 = vadd.f32 %v1465_v51, %v1442_v54 }
 0x25a   :  { %v1545_v57 = vpop.f32.mrf.mxu0 }
 0x25b   :  { %v1572_v63 = vadd.f32 %v1571_v60, %v1545_v57  ;;  %v1665_v33 = vpop.f32.mrf.mxu1  ;;  %v2197_v57 = vpop.permute.xlu0 %2196 }
 0x25c   :  { %v1489_v58 = vpop.f32.mrf.mxu2  ;;  %v1619_v62 = vpop.f32.mrf.mxu3 }
 0x25d   :  { %v1490_v59 = vadd.f32 %v1489_v58, %v1466_v56 }
 0x25f   :  { %v4560_v61 = vadd.f32 %v1511_v55, %v1490_v59 }
 0x262   :  { %v1643_v0 = vpop.f32.mrf.mxu0 }
 0x263   :  { %v1773_v11 = vpop.f32.mrf.mxu1 }
 0x264   :  { %v1595_v1 = vpop.f32.mrf.mxu2  ;;  %v1725_v31 = vpop.f32.mrf.mxu3 }
 0x265   :  { %v1596_v2 = vadd.f32 %v1595_v1, %v1572_v63 }
 0x267   :  { %v1620_v3 = vadd.f32 %v1619_v62, %v1596_v2  ;;  %v2200_v62 = vsel %vm845_vm1, %v2197_v57, 0 }
 0x269   :  { %v1644_v6 = vadd.f32 %v1643_v0, %v1620_v3  ;;  %v4570_v3 = vand.u32 4294901760, %v2200_v62 }
 0x26a   :  { %v1749_v12 = vpop.f32.mrf.mxu0 }
 0x26b   :  { %v1666_v7 = vadd.f32 %v1665_v33, %v1644_v6 }
 0x26c   :  { %v1699_v4 = vpop.f32.mrf.mxu2  ;;  %v1819_v23 = vpop.f32.mrf.mxu3 }
 0x26d   :  { %v1822_v8 = vmul.f32 0.35355338, %v1666_v7  ;;  %v1726_v10 = vadd.f32 %v1725_v31, %v1699_v4  ;;  %v4573_v4 = vsub.f32 %v2200_v62, %v4570_v3 }
 0x26f   :  { %v1824_v14 = vsel %vm845_vm1, %v1822_v8, -inf  ;;  %v1750_v5 = vadd.f32 %v1749_v12, %v1726_v10  ;;  %v2351_v12 = vpop.permute.xlu2 %2350 }
 0x270   :  { %v1825_v15 = vrot.slane %v1824_v14, 4 }
 0x271   :  { %v1774_v17 = vadd.f32 %v1773_v11, %v1750_v5  ;;  %v2245_v11 = vand.u32 4294901760, %v4573_v4 }
 0x272   :  { %v1826_v16 = vmax.f32 %v1824_v14, %v1825_v15 }
 0x274   :  { %v1827_v19 = vrot.slane %v1826_v16, 2  ;;  %v1797_v9 = vpop.f32.mrf.mxu2 }
 0x275   :  { %v1798_v21 = vadd.f32 %v1797_v9, %v1774_v17  ;;  %v2354_v17 = vsel %vm845_vm1, %v2351_v12, 0 }
 0x276   :  { %v1828_v22 = vmax.f32 %v1826_v16, %v1827_v19 }
 0x277   :  { %v1820_v18 = vadd.f32 %v1819_v23, %v1798_v21 }
 0x278   :  { %v1829_v24 = vrot.slane %v1828_v22, 1 }
 0x279   :  { %v1823_v25 = vmul.f32 0.35355338, %v1820_v18  ;;  %v2371_v18 = vand.u32 4294901760, %v2354_v17 }
 0x27a   :  { %v1830_v27 = vmax.f32 %v1828_v22, %v1829_v24  ;;  %v2246_v24 = vsub.f32 %v4573_v4, %v2245_v11 }
 0x27b   :  { %v1831_v30 = vsel %vm845_vm1, %v1823_v25, -inf }
 0x27c   :  { %v1838_v34 = vsub.f32 %v1822_v8, %v1830_v27  ;;  %v1832_v35 = vrot.slane %v1831_v30, 4  ;;  %v2195_v27 = vpop.permute.xlu1 %2194 }
 0x27e   :  { %v1840_v20 = vmul.f32 1.442695, %v1838_v34  ;;  %v1833_v37 = vmax.f32 %v1831_v30, %v1832_v35 }
 0x280   :  { %3871 = vpow2.f32 %v1840_v20  ;;  %v1834_v38 = vrot.slane %v1833_v37, 2 }
 0x282   :  { %v1835_v13 = vmax.f32 %v1833_v37, %v1834_v38  ;;  %v2398_v38 = vsub.f32 %v2354_v17, %v2371_v18 }
 0x284   :  { %v1836_v39 = vrot.slane %v1835_v13, 1 }
 0x286   :  { %v3872_v40 = vpop.eup %3871  ;;  %v1837_v41 = vmax.f32 %v1835_v13, %v1836_v39  ;;  %v2247_v13 = vand.u32 4294901760, %v2246_v24 }
 0x287   :  { %v1844_v26 = vsel %vm845_vm1, %v3872_v40, 0.0 }
 0x288   :  { %v1845_v42 = vrot.slane %v1844_v26, 4  ;;  %v1839_v32 = vsub.f32 %v1823_v25, %v1837_v41  ;;  %v2399_v41 = vand.u32 4294901760, %v2398_v38 }
 0x28a   :  { %v1846_v44 = vadd.f32 %v1845_v42, %v1844_v26  ;;  %v1842_v43 = vmul.f32 1.442695, %v1839_v32  ;;  %v2198_v26 = vsel %vm845_vm1, %v2195_v27, 0  ;;  %v2569_v32 = vpop.permute.xlu1 %2568 }
 0x28b   :  { %v2219_v42 = vand.u32 4294901760, %v2198_v26 }
 0x28c   :  { %v1847_v45 = vrot.slane %v1846_v44, 2  ;;  %3873 = vpow2.f32 %v1842_v43  ;;  %v2400_v43 = vsub.f32 %v2398_v38, %v2399_v41 }
 0x28e   :  { %v1848_v46 = vadd.f32 %v1847_v45, %v1846_v44  ;;  %v2589_v45 = vand.u32 4294901760, %v2569_v32 }
 0x290   :  { %v1849_v47 = vrot.slane %v1848_v46, 1 }
 0x292   :  { %v4565_v49 = vpop.eup %3873  ;;  %v1850_v50 = vadd.f32 %v1849_v47, %v1848_v46 }
 0x293   :  { %v1851_v51 = vsel %vm845_vm1, %v4565_v49, 0.0 }
 0x294   :  { %3875 = vrcp.f32 %v1850_v50  ;;  %v1852_v52 = vrot.slane %v1851_v51, 4  ;;  %v1869_v0 = vand.u32 2147483648, %v1850_v50  ;;  %v1867_v2 = vand.u32 2147483647, %v1850_v50 }
 0x295   :  { %vm1863_vm11 = vweird.f32 %v1850_v50 }
 0x296   :  { %v1853_v53 = vadd.f32 %v1852_v52, %v1851_v51  ;;  %v1870_v6 = vor.u32 1.1754944e-38, %v1869_v0  ;;  %vm1868_vm13 = vcmp.eq.f32.partialorder %v1867_v2, 8.507059e+37  ;;  %v2349_v51 = vpop.permute.xlu0 %2348 }
 0x298   :  { %v1854_v54 = vrot.slane %v1853_v53, 2 }
 0x29a   :  { %v3876_v55 = vpop.eup %3875  ;;  %v1855_v56 = vadd.f32 %v1854_v54, %v1853_v53  ;;  %v2352_v53 = vsel %vm845_vm1, %v2349_v51, 0 }
 0x29b   :  { %v1859_v58 = vmul.f32 %v3876_v55, %v1850_v50  ;;  %vm1864_vm10 = vweird.f32 %v3876_v55  ;;  %v2616_v50 = vsub.f32 %v2569_v32, %v2589_v45  ;;  %v2373_v57 = vand.u32 4294901760, %v2352_v53 }
 0x29c   :  { %v1856_v59 = vrot.slane %v1855_v56, 1  ;;  %vm1865_vm12 = vmor %vm1863_vm11, %vm1864_vm10 }
 0x29d   :  { %v1860_v60 = vsub.f32 1.0, %v1859_v58  ;;  %v2617_v54 = vand.u32 4294901760, %v2616_v50  ;;  %v2374_v62 = vsub.f32 %v2352_v53, %v2373_v57 }
 0x29e   :  { %v1857_v63 = vadd.f32 %v1856_v59, %v1855_v56 }
 0x29f   :  { %v1861_v1 = vmul.f32 %v3876_v55, %v1860_v60  ;;  %v2618_v59 = vsub.f32 %v2616_v50, %v2617_v54 }
 0x2a0   :  { %3877 = vrcp.f32 %v1857_v63  ;;  %v1884_v9 = vand.u32 2147483648, %v1857_v63  ;;  %v1882_v22 = vand.u32 2147483647, %v1857_v63  ;;  %vm1878_vm15 = vweird.f32 %v1857_v63 }
 0x2a1   :  { %v1862_v33 = vadd.f32 %v3876_v55, %v1861_v1  ;;  %v2619_v0 = vand.u32 4294901760, %v2618_v59  ;;  %v2375_v1 = vand.u32 4294901760, %v2374_v62 }
 0x2a2   :  { %v1885_v34 = vor.u32 1.1754944e-38, %v1884_v9  ;;  %vm1883_vm3 = vcmp.eq.f32.partialorder %v1882_v22, 8.507059e+37 }
 0x2a3   :  { %v1866_v7 = vsel %vm1865_vm12, %v3876_v55, %v1862_v33  ;;  %v2721_v55 = vpop.permute.xlu2 %2720 }
 0x2a4   :  { %v1871_v31 = vsel %vm1868_vm13, %v1870_v6, %v1866_v7  ;;  %v4596_v58 = vand.u32 4294901760, %v2721_v55 }
 0x2a5   :  { %v1872_v8 = vmul.f32 %v3872_v40, %v1871_v31 }
 0x2a6   :  { %v3878_v10 = vpop.eup %3877 }
 0x2a7   :  { %v1893_v14 = vsel %vm845_vm1, %v1872_v8, 0  ;;  %v1874_v5 = vmul.f32 %v3878_v10, %v1857_v63  ;;  %vm1879_vm14 = vweird.f32 %v3878_v10  ;;  %v4599_v63 = vsub.f32 %v2721_v55, %v4596_v58 }
 0x2a8   :  { %v1912_v15 = vand.u32 4294901760, %v1893_v14  ;;  %vm1880_vm2 = vmor %vm1878_vm15, %vm1879_vm14 }
 0x2a9   :  { %v1875_v16 = vsub.f32 1.0, %v1874_v5  ;;  %v2769_v2 = vand.u32 4294901760, %v4599_v63 }
 0x2aa   :  { %1943 = vmatmul.f32.vlgmr.msrb.gmra.mxu1 %v1912_v15  ;;  %v1913_v19 = vsub.f32 %v1893_v14, %v1912_v15 }
 0x2ab   :  { %2140 = vmatpush.msrb.mxu1 %v4548_v29  ;;  %v1876_v21 = vmul.f32 %v3878_v10, %v1875_v16  ;;  %v2770_v33 = vsub.f32 %v4599_v63, %v2769_v2 }
 0x2ac   :  { %1967 = vmatmul.f32.vlgmr.msrb.gmra.mxu2 %v1913_v19  ;;  %v1914_v23 = vand.u32 4294901760, %v1913_v19 }
 0x2ad   :  { %2166 = vmatpush.msrb.mxu2 %v2091_v28  ;;  %v1877_v25 = vadd.f32 %v3878_v10, %v1876_v21  ;;  %v2771_v7 = vand.u32 4294901760, %v2770_v33 }
 0x2ae   :  { %1991 = vmatmul.f32.vlgmr.msrb.gmra.mxu3 %v1914_v23  ;;  %v1915_v30 = vsub.f32 %v1913_v19, %v1914_v23 }
 0x2af   :  { %2188 = vmatpush.msrb.mxu3 %v4548_v29  ;;  %v1881_v35 = vsel %vm1880_vm2, %v3878_v10, %v1877_v25 }
 0x2b0   :  { %v1916_v20 = vand.u32 4294901760, %v1915_v30  ;;  %v1886_v37 = vsel %vm1883_vm3, %v1885_v34, %v1881_v35 }
 0x2b1   :  { %v1887_v39 = vmul.f32 %v4565_v49, %v1886_v37  ;;  %v2401_v49 = vand.u32 4294901760, %v2400_v43 }
 0x2b2   :  { %1917 = vmatmul.f32.vlgmr.msrb.gmra.mxu0 %v1916_v20  ;;  %2037 = vmatmul.f32.vlgmr.msra.gmra.mxu1 %v1912_v15 }
 0x2b3   :  { %2117 = vmatpush.msrb.mxu0 %v4551_v36  ;;  %2248 = vmatpush.xpose.msra.mxu1 %v2247_v13  ;;  %v2046_v28 = vsel %vm845_vm1, %v1887_v39, 0  ;;  %v2220_v36 = vsub.f32 %v2198_v26, %v2219_v42 }
 0x2b4   :  { %v2065_v40 = vand.u32 4294901760, %v2046_v28 }
 0x2b5   :  { %v2221_v52 = vand.u32 4294901760, %v2220_v36 }
 0x2b6   :  { %v2066_v29 = vsub.f32 %v2046_v28, %v2065_v40  ;;  %2096 = vmatmul.f32.vlgmr.msra.gmra.mxu3 %v2065_v40 }
 0x2b7   :  { %2294 = vmatpush.xpose.msra.mxu3 %v4570_v3  ;;  %v2222_v56 = vsub.f32 %v2220_v36, %v2221_v52 }
 0x2b8   :  { %v2067_v44 = vand.u32 4294901760, %v2066_v29 }
 0x2b9   :  { %v2223_v60 = vand.u32 4294901760, %v2222_v56 }
 0x2ba   :  { %2015 = vmatmul.f32.vlgmr.msra.gmra.mxu0 %v1912_v15  ;;  %2144 = vmatmul.f32.vlgmr.msrb.gmra.mxu1 %v2067_v44  ;;  %v2068_v46 = vsub.f32 %v2066_v29, %v2067_v44 }
 0x2bb   :  { %2218 = vmatpush.xpose.msra.mxu0 %v4570_v3  ;;  %2342 = vmatpush.xpose.msrb.mxu1 %v4570_v3  ;;  %v2376_v3 = vsub.f32 %v2374_v62, %v2375_v1 }
 0x2bc   :  { %v2069_v47 = vand.u32 4294901760, %v2068_v46 }
 0x2bd   :  { %v2377_v6 = vand.u32 4294901760, %v2376_v3 }
 0x2be   :  { %2070 = vmatmul.f32.vlgmr.msra.gmra.mxu2 %v2069_v47  ;;  %2190 = vmatmul.f32.vlgmr.msrb.gmra.mxu3 %v2065_v40 }
 0x2bf   :  { %2271 = vmatpush.xpose.msra.mxu2 %v4573_v4  ;;  %2402 = vmatpush.xpose.msrb.mxu3 %v2401_v49 }
 0x2c2   :  { %2120 = vmatmul.f32.vlgmr.msrb.gmra.mxu0 %v2066_v29  ;;  %2250 = vmatmul.f32.vlgmr.msra.gmra.mxu1 %v2219_v42 }
 0x2c3   :  { %2320 = vmatpush.xpose.msrb.mxu0 %v2245_v11  ;;  %2448 = vmatpush.xpose.msra.mxu1 %v2371_v18 }
 0x2c6   :  { %2168 = vmatmul.f32.vlgmr.msrb.gmra.mxu2 %v2065_v40  ;;  %2298 = vmatmul.f32.vlgmr.msra.gmra.mxu3 %v2221_v52 }
 0x2c7   :  { %2372 = vmatpush.xpose.msrb.mxu2 %v2371_v18  ;;  %2496 = vmatpush.xpose.msra.mxu3 %v2371_v18 }
 0x2ca   :  { %2224 = vmatmul.f32.vlgmr.msra.gmra.mxu0 %v2223_v60  ;;  %2344 = vmatmul.f32.vlgmr.msrb.gmra.mxu1 %v2219_v42 }
 0x2cb   :  { %2425 = vmatpush.xpose.msra.mxu0 %v2398_v38  ;;  %2620 = vmatpush.msrb.mxu1 %v2619_v0 }
 0x2ce   :  { %2274 = vmatmul.f32.vlgmr.msra.gmra.mxu2 %v2220_v36  ;;  %2404 = vmatmul.f32.vlgmr.msrb.gmra.mxu3 %v2373_v57 }
 0x2cf   :  { %2474 = vmatpush.xpose.msra.mxu2 %v2399_v41  ;;  %2666 = vmatpush.msrb.mxu3 %v2589_v45 }
 0x2d2   :  { %2322 = vmatmul.f32.vlgmr.msrb.gmra.mxu0 %v2219_v42  ;;  %2452 = vmatmul.f32.vlgmr.msra.gmra.mxu1 %v2375_v1 }
 0x2d3   :  { %2590 = vmatpush.msrb.mxu0 %v2589_v45  ;;  %2714 = vmatpush.msra.mxu1 %v2589_v45 }
 0x2d6   :  { %2378 = vmatmul.f32.vlgmr.msrb.gmra.mxu2 %v2377_v6  ;;  %2498 = vmatmul.f32.vlgmr.msra.gmra.mxu3 %v2373_v57 }
 0x2d7   :  { %2643 = vmatpush.msrb.mxu2 %v2616_v50  ;;  %2772 = vmatpush.msra.mxu3 %v2771_v7 }
 0x2da   :  { %2428 = vmatmul.f32.vlgmr.msra.gmra.mxu0 %v2374_v62 }
 0x2db   :  { %2692 = vmatpush.msra.mxu0 %v2617_v54 }
 0x2de   :  { %2476 = vmatmul.f32.vlgmr.msra.gmra.mxu2 %v2373_v57 }
 0x2df   :  { %2742 = vmatpush.msra.mxu2 %v4596_v58 }
 0x327   :  { %v1944_v31 = vpop.f32.mrf.mxu1 }
 0x32f   :  { %v1918_v4 = vpop.f32.mrf.mxu0  ;;  %v1968_v10 = vpop.f32.mrf.mxu2 }
 0x330   :  { %v1945_v8 = vadd.f32 %v1944_v31, %v1918_v4  ;;  %v2038_v15 = vpop.f32.mrf.mxu1 }
 0x331   :  { %v1992_v12 = vpop.f32.mrf.mxu3 }
 0x332   :  { %v1969_v14 = vadd.f32 %v1968_v10, %v1945_v8 }
 0x334   :  { %v1993_v5 = vadd.f32 %v1992_v12, %v1969_v14 }
 0x337   :  { %v2016_v11 = vpop.f32.mrf.mxu0 }
 0x338   :  { %v2017_v16 = vadd.f32 %v2016_v11, %v1993_v5  ;;  %v2145_v21 = vpop.f32.mrf.mxu1 }
 0x339   :  { %v2097_v19 = vpop.f32.mrf.mxu3 }
 0x33a   :  { %v2039_v17 = vadd.f32 %v2038_v15, %v2017_v16 }
 0x33c   :  { %3552 = vrot.lane.b32.xlu0 %v2039_v17, %s4099_s26 }
 0x33f   :  { %v2121_v9 = vpop.f32.mrf.mxu0 }
 0x340   :  { %v2251_v35 = vpop.f32.mrf.mxu1 }
 0x341   :  { %v2071_v22 = vpop.f32.mrf.mxu2  ;;  %v2191_v24 = vpop.f32.mrf.mxu3 }
 0x342   :  { %v2098_v23 = vadd.f32 %v2097_v19, %v2071_v22 }
 0x344   :  { %v2122_v18 = vadd.f32 %v2121_v9, %v2098_v23 }
 0x346   :  { %v2146_v27 = vadd.f32 %v2145_v21, %v2122_v18 }
 0x347   :  { %v2225_v25 = vpop.f32.mrf.mxu0 }
 0x348   :  { %v2252_v38 = vadd.f32 %v2251_v35, %v2225_v25  ;;  %v2345_v41 = vpop.f32.mrf.mxu1 }
 0x349   :  { %v2169_v30 = vpop.f32.mrf.mxu2  ;;  %v2299_v37 = vpop.f32.mrf.mxu3 }
 0x34a   :  { %v2170_v34 = vadd.f32 %v2169_v30, %v2146_v27  ;;  %v2875_v30 = vpop.permute.xlu0 %2874 }
 0x34c   :  { %v2192_v20 = vadd.f32 %v2191_v24, %v2170_v34 }
 0x34e   :  { %3554 = vrot.lane.b32.xlu0 %v2192_v20, %s4099_s26 }
 0x34f   :  { %v2323_v13 = vpop.f32.mrf.mxu0 }
 0x350   :  { %v2453_v49 = vpop.f32.mrf.mxu1 }
 0x351   :  { %v2275_v39 = vpop.f32.mrf.mxu2  ;;  %v2405_v42 = vpop.f32.mrf.mxu3 }
 0x352   :  { %v2276_v28 = vadd.f32 %v2275_v39, %v2252_v38 }
 0x354   :  { %v2300_v40 = vadd.f32 %v2299_v37, %v2276_v28  ;;  %v2878_v37 = vsel %vm845_vm1, %v2875_v30, 0 }
 0x356   :  { %v2324_v26 = vadd.f32 %v2323_v13, %v2300_v40  ;;  %v4616_v40 = vand.u32 4294901760, %v2878_v37 }
 0x357   :  { %v2429_v45 = vpop.f32.mrf.mxu0 }
 0x358   :  { %v2346_v29 = vadd.f32 %v2345_v41, %v2324_v26 }
 0x359   :  { %v2379_v32 = vpop.f32.mrf.mxu2  ;;  %v2499_v56 = vpop.f32.mrf.mxu3 }
 0x35a   :  { %v2502_v44 = vmul.f32 0.35355338, %v2346_v29  ;;  %v2406_v43 = vadd.f32 %v2405_v42, %v2379_v32  ;;  %v4619_v32 = vsub.f32 %v2878_v37, %v4616_v40 }
 0x35c   :  { %v2504_v46 = vsel %vm845_vm1, %v2502_v44, -inf  ;;  %v2430_v36 = vadd.f32 %v2429_v45, %v2406_v43  ;;  %v3029_v45 = vpop.permute.xlu2 %3028 }
 0x35d   :  { %v2505_v47 = vrot.slane %v2504_v46, 4 }
 0x35e   :  { %v2454_v51 = vadd.f32 %v2453_v49, %v2430_v36  ;;  %v2923_v49 = vand.u32 4294901760, %v4619_v32 }
 0x35f   :  { %v2506_v50 = vmax.f32 %v2504_v46, %v2505_v47 }
 0x361   :  { %v2507_v52 = vrot.slane %v2506_v50, 2  ;;  %v2477_v53 = vpop.f32.mrf.mxu2 }
 0x362   :  { %v2478_v54 = vadd.f32 %v2477_v53, %v2454_v51  ;;  %v3032_v51 = vsel %vm845_vm1, %v3029_v45, 0 }
 0x363   :  { %v2508_v55 = vmax.f32 %v2506_v50, %v2507_v52 }
 0x364   :  { %v2500_v57 = vadd.f32 %v2499_v56, %v2478_v54 }
 0x365   :  { %v2509_v59 = vrot.slane %v2508_v55, 1 }
 0x366   :  { %v2503_v60 = vmul.f32 0.35355338, %v2500_v57  ;;  %v3049_v57 = vand.u32 4294901760, %v3032_v51 }
 0x367   :  { %v2510_v62 = vmax.f32 %v2508_v55, %v2509_v59  ;;  %v2924_v59 = vsub.f32 %v4619_v32, %v2923_v49 }
 0x368   :  { %v2511_v0 = vsel %vm845_vm1, %v2503_v60, -inf }
 0x369   :  { %v2518_v1 = vsub.f32 %v2502_v44, %v2510_v62  ;;  %v2512_v3 = vrot.slane %v2511_v0, 4  ;;  %v2873_v62 = vpop.permute.xlu1 %2872 }
 0x36b   :  { %v2520_v33 = vmul.f32 1.442695, %v2518_v1  ;;  %v2513_v6 = vmax.f32 %v2511_v0, %v2512_v3 }
 0x36d   :  { %3879 = vpow2.f32 %v2520_v33  ;;  %v2514_v7 = vrot.slane %v2513_v6, 2 }
 0x36f   :  { %v2515_v31 = vmax.f32 %v2513_v6, %v2514_v7  ;;  %v3076_v7 = vsub.f32 %v3032_v51, %v3049_v57 }
 0x371   :  { %v2516_v4 = vrot.slane %v2515_v31, 1 }
 0x373   :  { %v3880_v8 = vpop.eup %3879  ;;  %v2517_v10 = vmax.f32 %v2515_v31, %v2516_v4  ;;  %v2925_v31 = vand.u32 4294901760, %v2924_v59 }
 0x374   :  { %v2524_v12 = vsel %vm845_vm1, %v3880_v8, 0.0 }
 0x375   :  { %v2525_v14 = vrot.slane %v2524_v12, 4  ;;  %v2519_v5 = vsub.f32 %v2503_v60, %v2517_v10  ;;  %v3077_v10 = vand.u32 4294901760, %v3076_v7 }
 0x377   :  { %v2526_v15 = vadd.f32 %v2525_v14, %v2524_v12  ;;  %v2522_v11 = vmul.f32 1.442695, %v2519_v5  ;;  %v2876_v12 = vsel %vm845_vm1, %v2873_v62, 0  ;;  %v3247_v14 = vpop.permute.xlu1 %3246 }
 0x379   :  { %v2527_v16 = vrot.slane %v2526_v15, 2  ;;  %3881 = vpow2.f32 %v2522_v11  ;;  %v3078_v11 = vsub.f32 %v3076_v7, %v3077_v10 }
 0x37b   :  { %v2528_v17 = vadd.f32 %v2527_v16, %v2526_v15  ;;  %v3267_v16 = vand.u32 4294901760, %v3247_v14 }
 0x37d   :  { %v2529_v19 = vrot.slane %v2528_v17, 1 }
 0x37f   :  { %v4611_v9 = vpop.eup %3881  ;;  %v2530_v21 = vadd.f32 %v2529_v19, %v2528_v17 }
 0x380   :  { %v2531_v22 = vsel %vm845_vm1, %v4611_v9, 0.0 }
 0x381   :  { %3883 = vrcp.f32 %v2530_v21  ;;  %v2532_v23 = vrot.slane %v2531_v22, 4  ;;  %v2549_v13 = vand.u32 2147483648, %v2530_v21  ;;  %v2547_v28 = vand.u32 2147483647, %v2530_v21 }
 0x382   :  { %vm2543_vm5 = vweird.f32 %v2530_v21 }
 0x383   :  { %v2533_v18 = vadd.f32 %v2532_v23, %v2531_v22  ;;  %v2550_v26 = vor.u32 1.1754944e-38, %v2549_v13  ;;  %vm2548_vm7 = vcmp.eq.f32.partialorder %v2547_v28, 8.507059e+37  ;;  %v3027_v22 = vpop.permute.xlu0 %3026 }
 0x385   :  { %v2534_v24 = vrot.slane %v2533_v18, 2 }
 0x387   :  { %v3884_v25 = vpop.eup %3883  ;;  %v2535_v27 = vadd.f32 %v2534_v24, %v2533_v18  ;;  %v3030_v18 = vsel %vm845_vm1, %v3027_v22, 0 }
 0x388   :  { %v2539_v34 = vmul.f32 %v3884_v25, %v2530_v21  ;;  %vm2544_vm4 = vweird.f32 %v3884_v25  ;;  %v3294_v21 = vsub.f32 %v3247_v14, %v3267_v16  ;;  %v3051_v30 = vand.u32 4294901760, %v3030_v18 }
 0x389   :  { %v2536_v35 = vrot.slane %v2535_v27, 1  ;;  %vm2545_vm6 = vmor %vm2543_vm5, %vm2544_vm4 }
 0x38a   :  { %v2540_v20 = vsub.f32 1.0, %v2539_v34  ;;  %v3295_v24 = vand.u32 4294901760, %v3294_v21  ;;  %v3052_v37 = vsub.f32 %v3030_v18, %v3051_v30 }
 0x38b   :  { %v2537_v38 = vadd.f32 %v2536_v35, %v2535_v27 }
 0x38c   :  { %v2541_v39 = vmul.f32 %v3884_v25, %v2540_v20  ;;  %v3296_v35 = vsub.f32 %v3294_v21, %v3295_v24 }
 0x38d   :  { %3885 = vrcp.f32 %v2537_v38  ;;  %v2564_v52 = vand.u32 2147483648, %v2537_v38  ;;  %v2562_v55 = vand.u32 2147483647, %v2537_v38  ;;  %vm2558_vm9 = vweird.f32 %v2537_v38 }
 0x38e   :  { %v2542_v41 = vadd.f32 %v3884_v25, %v2541_v39  ;;  %v3297_v13 = vand.u32 4294901760, %v3296_v35  ;;  %v3053_v39 = vand.u32 4294901760, %v3052_v37 }
 0x38f   :  { %v2565_v0 = vor.u32 1.1754944e-38, %v2564_v52  ;;  %vm2563_vm11 = vcmp.eq.f32.partialorder %v2562_v55, 8.507059e+37 }
 0x390   :  { %v2546_v29 = vsel %vm2545_vm6, %v3884_v25, %v2542_v41  ;;  %v3399_v25 = vpop.permute.xlu2 %3398  ;;  %vm3576_vm6 = vcmask 130048  }
 0x391   :  { %v2551_v42 = vsel %vm2548_vm7, %v2550_v26, %v2546_v29  ;;  %v4642_v34 = vand.u32 4294901760, %v3399_v25  ;;  %vm3579_vm7 = vcmask 195584  }
 0x392   :  { %v2552_v44 = vmul.f32 %v3880_v8, %v2551_v42 }
 0x393   :  { %v3886_v43 = vpop.eup %3885 }
 0x394   :  { %v2554_v46 = vmul.f32 %v3886_v43, %v2537_v38  ;;  %v2572_v36 = vsel %vm845_vm1, %v2552_v44, 0  ;;  %vm2559_vm8 = vweird.f32 %v3886_v43  ;;  %v4645_v38 = vsub.f32 %v3399_v25, %v4642_v34 }
 0x395   :  { %v2591_v47 = vand.u32 4294901760, %v2572_v36  ;;  %vm2560_vm10 = vmor %vm2558_vm9, %vm2559_vm8 }
 0x396   :  { %v2555_v50 = vsub.f32 1.0, %v2554_v46  ;;  %v3447_v28 = vand.u32 4294901760, %v4645_v38 }
 0x397   :  { %v2592_v53 = vsub.f32 %v2572_v36, %v2591_v47  ;;  %2622 = vmatmul.f32.vlgmr.msrb.gmra.mxu1 %v2591_v47 }
 0x398   :  { %v2556_v54 = vmul.f32 %v3886_v43, %v2555_v50  ;;  %2818 = vmatpush.msrb.mxu1 %v4596_v58  ;;  %v3448_v41 = vsub.f32 %v4645_v38, %v3447_v28 }
 0x399   :  { %2646 = vmatmul.f32.vlgmr.msrb.gmra.mxu2 %v2592_v53  ;;  %v2593_v56 = vand.u32 4294901760, %v2592_v53 }
 0x39a   :  { %v2557_v60 = vadd.f32 %v3886_v43, %v2556_v54  ;;  %2844 = vmatpush.msrb.mxu2 %v2769_v2  ;;  %v3449_v29 = vand.u32 4294901760, %v3448_v41 }
 0x39b   :  { %2670 = vmatmul.f32.vlgmr.msrb.gmra.mxu3 %v2593_v56  ;;  %v2594_v1 = vsub.f32 %v2592_v53, %v2593_v56 }
 0x39c   :  { %v2561_v3 = vsel %vm2560_vm10, %v3886_v43, %v2557_v60  ;;  %2866 = vmatpush.msrb.mxu3 %v4596_v58  ;;  %v2897_v58 = vand.u32 4294901760, %v2876_v12 }
 0x39d   :  { %v2566_v33 = vsel %vm2563_vm11, %v2565_v0, %v2561_v3  ;;  %v2595_v6 = vand.u32 4294901760, %v2594_v1 }
 0x39e   :  { %v2567_v4 = vmul.f32 %v4611_v9, %v2566_v33  ;;  %v3079_v9 = vand.u32 4294901760, %v3078_v11 }
 0x39f   :  { %2596 = vmatmul.f32.vlgmr.msrb.gmra.mxu0 %v2595_v6  ;;  %2716 = vmatmul.f32.vlgmr.msra.gmra.mxu1 %v2591_v47 }
 0x3a0   :  { %2795 = vmatpush.msrb.mxu0 %v4599_v63  ;;  %2926 = vmatpush.xpose.msra.mxu1 %v2925_v31  ;;  %v2724_v2 = vsel %vm845_vm1, %v2567_v4, 0  ;;  %v2898_v63 = vsub.f32 %v2876_v12, %v2897_v58 }
 0x3a1   :  { %v2743_v8 = vand.u32 4294901760, %v2724_v2 }
 0x3a2   :  { %v2899_v23 = vand.u32 4294901760, %v2898_v63 }
 0x3a3   :  { %v2744_v5 = vsub.f32 %v2724_v2, %v2743_v8  ;;  %2774 = vmatmul.f32.vlgmr.msra.gmra.mxu3 %v2743_v8 }
 0x3a4   :  { %2972 = vmatpush.xpose.msra.mxu3 %v4616_v40  ;;  %v2900_v27 = vsub.f32 %v2898_v63, %v2899_v23 }
 0x3a5   :  { %v2745_v15 = vand.u32 4294901760, %v2744_v5 }
 0x3a6   :  { %v2901_v20 = vand.u32 4294901760, %v2900_v27 }
 0x3a7   :  { %2694 = vmatmul.f32.vlgmr.msra.gmra.mxu0 %v2591_v47  ;;  %2822 = vmatmul.f32.vlgmr.msrb.gmra.mxu1 %v2745_v15  ;;  %v2746_v17 = vsub.f32 %v2744_v5, %v2745_v15 }
 0x3a8   :  { %2896 = vmatpush.xpose.msra.mxu0 %v4616_v40  ;;  %3020 = vmatpush.xpose.msrb.mxu1 %v4616_v40  ;;  %v3054_v40 = vsub.f32 %v3052_v37, %v3053_v39 }
 0x3a9   :  { %v2747_v19 = vand.u32 4294901760, %v2746_v17 }
 0x3aa   :  { %v3055_v26 = vand.u32 4294901760, %v3054_v40 }
 0x3ab   :  { %2748 = vmatmul.f32.vlgmr.msra.gmra.mxu2 %v2747_v19  ;;  %2868 = vmatmul.f32.vlgmr.msrb.gmra.mxu3 %v2743_v8 }
 0x3ac   :  { %2949 = vmatpush.xpose.msra.mxu2 %v4619_v32  ;;  %3080 = vmatpush.xpose.msrb.mxu3 %v3079_v9 }
 0x3af   :  { %2798 = vmatmul.f32.vlgmr.msrb.gmra.mxu0 %v2744_v5  ;;  %2928 = vmatmul.f32.vlgmr.msra.gmra.mxu1 %v2897_v58 }
 0x3b0   :  { %2998 = vmatpush.xpose.msrb.mxu0 %v2923_v49  ;;  %3126 = vmatpush.xpose.msra.mxu1 %v3049_v57 }
 0x3b3   :  { %2846 = vmatmul.f32.vlgmr.msrb.gmra.mxu2 %v2743_v8  ;;  %2976 = vmatmul.f32.vlgmr.msra.gmra.mxu3 %v2899_v23 }
 0x3b4   :  { %3050 = vmatpush.xpose.msrb.mxu2 %v3049_v57  ;;  %3174 = vmatpush.xpose.msra.mxu3 %v3049_v57 }
 0x3b7   :  { %2902 = vmatmul.f32.vlgmr.msra.gmra.mxu0 %v2901_v20  ;;  %3022 = vmatmul.f32.vlgmr.msrb.gmra.mxu1 %v2897_v58 }
 0x3b8   :  { %3103 = vmatpush.xpose.msra.mxu0 %v3076_v7  ;;  %3298 = vmatpush.msrb.mxu1 %v3297_v13 }
 0x3bb   :  { %2952 = vmatmul.f32.vlgmr.msra.gmra.mxu2 %v2898_v63  ;;  %3082 = vmatmul.f32.vlgmr.msrb.gmra.mxu3 %v3051_v30 }
 0x3bc   :  { %3152 = vmatpush.xpose.msra.mxu2 %v3077_v10  ;;  %3344 = vmatpush.msrb.mxu3 %v3267_v16 }
 0x3bf   :  { %3000 = vmatmul.f32.vlgmr.msrb.gmra.mxu0 %v2897_v58  ;;  %3130 = vmatmul.f32.vlgmr.msra.gmra.mxu1 %v3053_v39 }
 0x3c0   :  { %3268 = vmatpush.msrb.mxu0 %v3267_v16  ;;  %3392 = vmatpush.msra.mxu1 %v3267_v16 }
 0x3c3   :  { %3056 = vmatmul.f32.vlgmr.msrb.gmra.mxu2 %v3055_v26  ;;  %3176 = vmatmul.f32.vlgmr.msra.gmra.mxu3 %v3051_v30 }
 0x3c4   :  { %3321 = vmatpush.msrb.mxu2 %v3294_v21  ;;  %3450 = vmatpush.msra.mxu3 %v3449_v29 }
 0x3c7   :  { %3106 = vmatmul.f32.vlgmr.msra.gmra.mxu0 %v3052_v37 }
 0x3c8   :  { %3370 = vmatpush.msra.mxu0 %v3295_v24 }
 0x3cb   :  { %3154 = vmatmul.f32.vlgmr.msra.gmra.mxu2 %v3051_v30 }
 0x3cc   :  { %3420 = vmatpush.msra.mxu2 %v4642_v34 }
 0x414   :  { %v2623_v42 = vpop.f32.mrf.mxu1 }
 0x41c   :  { %v2597_v32 = vpop.f32.mrf.mxu0  ;;  %v2647_v43 = vpop.f32.mrf.mxu2 }
 0x41d   :  { %v2624_v44 = vadd.f32 %v2623_v42, %v2597_v32  ;;  %v2717_v47 = vpop.f32.mrf.mxu1 }
 0x41e   :  { %v2671_v45 = vpop.f32.mrf.mxu3 }
 0x41f   :  { %v2648_v46 = vadd.f32 %v2647_v43, %v2624_v44 }
 0x421   :  { %v2672_v36 = vadd.f32 %v2671_v45, %v2648_v46 }
 0x424   :  { %v2695_v49 = vpop.f32.mrf.mxu0 }
 0x425   :  { %v2696_v50 = vadd.f32 %v2695_v49, %v2672_v36  ;;  %v2823_v54 = vpop.f32.mrf.mxu1 }
 0x426   :  { %v2775_v52 = vpop.f32.mrf.mxu3 }
 0x427   :  { %v2718_v51 = vadd.f32 %v2717_v47, %v2696_v50 }
 0x429   :  { %3560 = vrot.lane.b32.xlu1 %v2718_v51, %s4109_s15 }
 0x42c   :  { %v2799_v53 = vpop.f32.mrf.mxu0 }
 0x42d   :  { %v2929_v3 = vpop.f32.mrf.mxu1 }
 0x42e   :  { %v2749_v55 = vpop.f32.mrf.mxu2  ;;  %v2869_v59 = vpop.f32.mrf.mxu3 }
 0x42f   :  { %v2776_v56 = vadd.f32 %v2775_v52, %v2749_v55 }
 0x431   :  { %v2800_v57 = vadd.f32 %v2799_v53, %v2776_v56 }
 0x433   :  { %v2824_v62 = vadd.f32 %v2823_v54, %v2800_v57 }
 0x434   :  { %v2903_v60 = vpop.f32.mrf.mxu0 }
 0x435   :  { %v2930_v7 = vadd.f32 %v2929_v3, %v2903_v60  ;;  %v3023_v10 = vpop.f32.mrf.mxu1 }
 0x436   :  { %v2847_v0 = vpop.f32.mrf.mxu2  ;;  %v2977_v6 = vpop.f32.mrf.mxu3 }
 0x437   :  { %v2848_v1 = vadd.f32 %v2847_v0, %v2824_v62 }
 0x439   :  { %v2870_v33 = vadd.f32 %v2869_v59, %v2848_v1 }
 0x43b   :  { %3562 = vrot.lane.b32.xlu1 %v2870_v33, %s4109_s15 }
 0x43c   :  { %v3001_v31 = vpop.f32.mrf.mxu0 }
 0x43d   :  { %v3131_v9 = vpop.f32.mrf.mxu1 }
 0x43e   :  { %v2953_v4 = vpop.f32.mrf.mxu2  ;;  %v3083_v5 = vpop.f32.mrf.mxu3 }
 0x43f   :  { %v2954_v2 = vadd.f32 %v2953_v4, %v2930_v7 }
 0x441   :  { %v2978_v8 = vadd.f32 %v2977_v6, %v2954_v2 }
 0x443   :  { %v3002_v12 = vadd.f32 %v3001_v31, %v2978_v8 }
 0x444   :  { %v3107_v16 = vpop.f32.mrf.mxu0 }
 0x445   :  { %v3024_v14 = vadd.f32 %v3023_v10, %v3002_v12 }
 0x446   :  { %v3057_v58 = vpop.f32.mrf.mxu2  ;;  %v3177_v27 = vpop.f32.mrf.mxu3 }
 0x447   :  { %v3180_v15 = vmul.f32 0.35355338, %v3024_v14  ;;  %v3084_v11 = vadd.f32 %v3083_v5, %v3057_v58 }
 0x449   :  { %v3182_v17 = vsel %vm845_vm1, %v3180_v15, -inf  ;;  %v3108_v63 = vadd.f32 %v3107_v16, %v3084_v11 }
 0x44a   :  { %v3183_v19 = vrot.slane %v3182_v17, 4 }
 0x44b   :  { %v3132_v22 = vadd.f32 %v3131_v9, %v3108_v63 }
 0x44c   :  { %v3184_v21 = vmax.f32 %v3182_v17, %v3183_v19 }
 0x44e   :  { %v3185_v23 = vrot.slane %v3184_v21, 2  ;;  %v3155_v18 = vpop.f32.mrf.mxu2 }
 0x44f   :  { %v3156_v24 = vadd.f32 %v3155_v18, %v3132_v22 }
 0x450   :  { %v3186_v25 = vmax.f32 %v3184_v21, %v3185_v23 }
 0x451   :  { %v3178_v30 = vadd.f32 %v3177_v27, %v3156_v24 }
 0x452   :  { %v3187_v35 = vrot.slane %v3186_v25, 1 }
 0x453   :  { %v3181_v20 = vmul.f32 0.35355338, %v3178_v30 }
 0x454   :  { %v3188_v37 = vmax.f32 %v3186_v25, %v3187_v35 }
 0x455   :  { %v3189_v13 = vsel %vm845_vm1, %v3181_v20, -inf }
 0x456   :  { %v3196_v39 = vsub.f32 %v3180_v15, %v3188_v37  ;;  %v3190_v40 = vrot.slane %v3189_v13, 4 }
 0x458   :  { %v3198_v41 = vmul.f32 1.442695, %v3196_v39  ;;  %v3191_v26 = vmax.f32 %v3189_v13, %v3190_v40  ;;  %v3584_v39 = vld [vmem:[#allocation13 + $0x10] sm:$0xff] }
 0x45a   :  { %3887 = vpow2.f32 %v3198_v41  ;;  %v3192_v29 = vrot.slane %v3191_v26, 2 }
 0x45c   :  { %v3193_v42 = vmax.f32 %v3191_v26, %v3192_v29 }
 0x45e   :  { %v3194_v32 = vrot.slane %v3193_v42, 1 }
 0x460   :  { %v3888_v44 = vpop.eup %3887  ;;  %v3195_v43 = vmax.f32 %v3193_v42, %v3194_v32 }
 0x461   :  { %v3202_v45 = vsel %vm845_vm1, %v3888_v44, 0.0 }
 0x462   :  { %v3203_v46 = vrot.slane %v3202_v45, 4  ;;  %v3197_v36 = vsub.f32 %v3181_v20, %v3195_v43 }
 0x464   :  { %v3204_v47 = vadd.f32 %v3203_v46, %v3202_v45  ;;  %v3200_v49 = vmul.f32 1.442695, %v3197_v36 }
 0x466   :  { %v3205_v50 = vrot.slane %v3204_v47, 2  ;;  %3889 = vpow2.f32 %v3200_v49 }
 0x468   :  { %v3206_v51 = vadd.f32 %v3205_v50, %v3204_v47 }
 0x46a   :  { %v3207_v52 = vrot.slane %v3206_v51, 1 }
 0x46c   :  { %v3890_v53 = vpop.eup %3889  ;;  %v3208_v54 = vadd.f32 %v3207_v52, %v3206_v51 }
 0x46d   :  { %v3209_v55 = vsel %vm845_vm1, %v3890_v53, 0.0 }
 0x46e   :  { %3891 = vrcp.f32 %v3208_v54  ;;  %v3210_v56 = vrot.slane %v3209_v55, 4  ;;  %v3227_v6 = vand.u32 2147483648, %v3208_v54  ;;  %v3225_v31 = vand.u32 2147483647, %v3208_v54 }
 0x46f   :  { %vm3221_vm13 = vweird.f32 %v3208_v54 }
 0x470   :  { %v3211_v57 = vadd.f32 %v3210_v56, %v3209_v55  ;;  %v3228_v2 = vor.u32 1.1754944e-38, %v3227_v6  ;;  %vm3226_vm15 = vcmp.eq.f32.partialorder %v3225_v31, 8.507059e+37 }
 0x472   :  { %v3212_v59 = vrot.slane %v3211_v57, 2 }
 0x474   :  { %v3892_v60 = vpop.eup %3891  ;;  %v3213_v62 = vadd.f32 %v3212_v59, %v3211_v57 }
 0x475   :  { %v3217_v0 = vmul.f32 %v3892_v60, %v3208_v54  ;;  %vm3222_vm12 = vweird.f32 %v3892_v60 }
 0x476   :  { %v3214_v1 = vrot.slane %v3213_v62, 1  ;;  %vm3223_vm14 = vmor %vm3221_vm13, %vm3222_vm12 }
 0x477   :  { %v3218_v3 = vsub.f32 1.0, %v3217_v0 }
 0x478   :  { %v3215_v33 = vadd.f32 %v3214_v1, %v3213_v62 }
 0x479   :  { %v3219_v7 = vmul.f32 %v3892_v60, %v3218_v3 }
 0x47a   :  { %3893 = vrcp.f32 %v3215_v33  ;;  %v3242_v16 = vand.u32 2147483648, %v3215_v33  ;;  %v3240_v19 = vand.u32 2147483647, %v3215_v33  ;;  %vm3236_vm3 = vweird.f32 %v3215_v33 }
 0x47b   :  { %v3220_v4 = vadd.f32 %v3892_v60, %v3219_v7 }
 0x47c   :  { %v3243_v22 = vor.u32 1.1754944e-38, %v3242_v16  ;;  %vm3241_vm5 = vcmp.eq.f32.partialorder %v3240_v19, 8.507059e+37 }
 0x47d   :  { %v3224_v8 = vsel %vm3223_vm14, %v3892_v60, %v3220_v4  ;;  %v3583_v4 = vld [vmem:[#allocation13 + $0x8] sm:$0xff] }
 0x47e   :  { %v3229_v10 = vsel %vm3226_vm15, %v3228_v2, %v3224_v8  ;;  %v3612_v2 = vand.u32 4294901760, %v3583_v4  ;;  %v3582_v8 = vld [vmem:[#allocation13] sm:$0xff] }
 0x47f   :  { %v3230_v12 = vmul.f32 %v3888_v44, %v3229_v10 }
 0x480   :  { %v3894_v14 = vpop.eup %3893  ;;  %v3658_v10 = vsub.f32 %v3583_v4, %v3612_v2 }
 0x481   :  { %v3232_v5 = vmul.f32 %v3894_v14, %v3215_v33  ;;  %v3250_v58 = vsel %vm845_vm1, %v3230_v12, 0  ;;  %vm3237_vm2 = vweird.f32 %v3894_v14  ;;  %v3614_v12 = vand.u32 4294901760, %v3582_v8 }
 0x482   :  { %v3269_v15 = vand.u32 4294901760, %v3250_v58  ;;  %vm3238_vm4 = vmor %vm3236_vm3, %vm3237_vm2 }
 0x483   :  { %v3233_v11 = vsub.f32 1.0, %v3232_v5  ;;  %v3664_v5 = vsub.f32 %v3582_v8, %v3614_v12 }
 0x484   :  { %3300 = vmatmul.f32.vlgmr.msrb.gmra.mxu1 %v3269_v15  ;;  %v3270_v17 = vsub.f32 %v3250_v58, %v3269_v15 }
 0x485   :  { %v3234_v63 = vmul.f32 %v3894_v14, %v3233_v11  ;;  %3496 = vmatpush.msrb.mxu1 %v4642_v34 }
 0x486   :  { %3324 = vmatmul.f32.vlgmr.msrb.gmra.mxu2 %v3270_v17  ;;  %v3271_v9 = vand.u32 4294901760, %v3270_v17 }
 0x487   :  { %v3235_v21 = vadd.f32 %v3894_v14, %v3234_v63  ;;  %3522 = vmatpush.msrb.mxu2 %v3447_v28  ;;  %v3553_v63 = vpop.permute.xlu0 %3552 }
 0x488   :  { %3348 = vmatmul.f32.vlgmr.msrb.gmra.mxu3 %v3271_v9  ;;  %v3272_v23 = vsub.f32 %v3270_v17, %v3271_v9  ;;  %v3574_v9 = vsel %vm845_vm1, %v4558_v48, %v3553_v63 }
 0x489   :  { %v3239_v18 = vsel %vm3238_vm4, %v3894_v14, %v3235_v21  ;;  %3544 = vmatpush.msrb.mxu3 %v4642_v34  ;;  %v3585_v34 = vld [vmem:[#allocation13 + $0x18] sm:$0xff]  ;;  %v3659_v14 = vand.u32 4294901760, %v3658_v10 }
 0x48a   :  { %v3244_v24 = vsel %vm3241_vm5, %v3243_v22, %v3239_v18  ;;  %v3273_v25 = vand.u32 4294901760, %v3272_v23  ;;  %v4663_v26 = vand.u32 4294901760, %v3585_v34 }
 0x48b   :  { %v3245_v27 = vmul.f32 %v3890_v53, %v3244_v24  ;;  %v3660_v58 = vsub.f32 %v3658_v10, %v3659_v14 }
 0x48c   :  { %3274 = vmatmul.f32.vlgmr.msrb.gmra.mxu0 %v3273_v25  ;;  %3394 = vmatmul.f32.vlgmr.msra.gmra.mxu1 %v3269_v15  ;;  %v3646_v32 = vsub.f32 %v3585_v34, %v4663_v26 }
 0x48d   :  { %3473 = vmatpush.msrb.mxu0 %v4645_v38  ;;  %v3402_v30 = vsel %vm845_vm1, %v3245_v27, 0  ;;  %v4665_v38 = vand.u32 4294901760, %v3584_v39  ;;  %v3661_v11 = vand.u32 4294901760, %v3660_v58 }
 0x48e   :  { %v3421_v35 = vand.u32 4294901760, %v3402_v30  ;;  %v3647_v45 = vand.u32 4294901760, %v3646_v32 }
 0x48f   :  { %v3652_v44 = vsub.f32 %v3584_v39, %v4665_v38 }
 0x490   :  { %v3422_v20 = vsub.f32 %v3402_v30, %v3421_v35  ;;  %3452 = vmatmul.f32.vlgmr.msra.gmra.mxu3 %v3421_v35  ;;  %v3648_v47 = vsub.f32 %v3646_v32, %v3647_v45 }
 0x491   :  { %3726 = vmatpush.msra.mxu3 %v4663_v26  ;;  %v3653_v46 = vand.u32 4294901760, %v3652_v44 }
 0x492   :  { %v3423_v28 = vand.u32 4294901760, %v3422_v20  ;;  %v3649_v52 = vand.u32 4294901760, %v3648_v47 }
 0x493   :  { %3728 = vmatpush.msra.mxu3 %v4665_v38  ;;  %v3654_v49 = vsub.f32 %v3652_v44, %v3653_v46 }
 0x494   :  { %3372 = vmatmul.f32.vlgmr.msra.gmra.mxu0 %v3269_v15  ;;  %3500 = vmatmul.f32.vlgmr.msrb.gmra.mxu1 %v3423_v28  ;;  %v3424_v37 = vsub.f32 %v3422_v20, %v3423_v28  ;;  %v3665_v15 = vand.u32 4294901760, %v3664_v5 }
 0x495   :  { %3609 = vmatpush.msra.mxu0 %v4663_v26  ;;  %v3655_v53 = vand.u32 4294901760, %v3654_v49  ;;  %3650 = vmatpush.msra.mxu1 %v3649_v52 }
 0x496   :  { %v3425_v13 = vand.u32 4294901760, %v3424_v37  ;;  %3730 = vmatpush.msra.mxu3 %v3612_v2  ;;  %v3666_v16 = vsub.f32 %v3664_v5, %v3665_v15 }
 0x497   :  { %3611 = vmatpush.msra.mxu0 %v4665_v38  ;;  %3656 = vmatpush.msra.mxu1 %v3655_v53 }
 0x498   :  { %3426 = vmatmul.f32.vlgmr.msra.gmra.mxu2 %v3425_v13  ;;  %3546 = vmatmul.f32.vlgmr.msrb.gmra.mxu3 %v3421_v35  ;;  %v3667_v17 = vand.u32 4294901760, %v3666_v16 }
 0x499   :  { %3692 = vmatpush.msra.mxu2 %v3646_v32  ;;  %3613 = vmatpush.msra.mxu0 %v3612_v2 }
 0x49a   :  { %3732 = vmatpush.msra.mxu3 %v3614_v12  ;;  %3662 = vmatpush.msra.mxu1 %v3661_v11 }
 0x49b   :  { %3695 = vmatpush.msra.mxu2 %v3652_v44  ;;  %3615 = vmatpush.msra.mxu0 %v3614_v12  ;;  %v3561_v19 = vpop.permute.xlu1 %3560 }
 0x49c   :  { %3476 = vmatmul.f32.vlgmr.msrb.gmra.mxu0 %v3422_v20  ;;  %3668 = vmatpush.msra.mxu1 %v3667_v17  ;;  %v3577_v21 = vsel %vm3576_vm6, %v3574_v9, %v3561_v19  ;;  %v3555_v20 = vpop.permute.xlu0 %3554 }
 0x49d   :  { %3698 = vmatpush.msra.mxu2 %v3658_v10  ;;  %3761 = vmatpush.msrb.mxu0 %v3647_v45  ;;  %v3575_v48 = vsel %vm845_vm1, %v4560_v61, %v3555_v20 }
 0x49e   :  { %3796 = vmatpush.msrb.mxu1 %v4663_v26 }
 0x49f   :  { %3701 = vmatpush.msra.mxu2 %v3664_v5  ;;  %3765 = vmatpush.msrb.mxu0 %v3653_v46 }
 0x4a0   :  { %3524 = vmatmul.f32.vlgmr.msrb.gmra.mxu2 %v3421_v35  ;;  %3798 = vmatpush.msrb.mxu1 %v4665_v38 }
 0x4a1   :  { %3769 = vmatpush.msrb.mxu0 %v3659_v14 }
 0x4a2   :  { %3800 = vmatpush.msrb.mxu1 %v3612_v2 }
 0x4a3   :  { %3773 = vmatpush.msrb.mxu0 %v3665_v15 }
 0x4a4   :  { %3802 = vmatpush.msrb.mxu1 %v3614_v12 }
 0x4ad   :  { %v3563_v28 = vpop.permute.xlu1 %3562 }
 0x4ae   :  { %v3578_v37 = vsel %vm3576_vm6, %v3575_v48, %v3563_v28 }
 0x501   :  { %v3301_v40 = vpop.f32.mrf.mxu1 }
 0x509   :  { %v3275_v41 = vpop.f32.mrf.mxu0  ;;  %v3325_v42 = vpop.f32.mrf.mxu2 }
 0x50a   :  { %v3302_v29 = vadd.f32 %v3301_v40, %v3275_v41  ;;  %v3395_v55 = vpop.f32.mrf.mxu1 }
 0x50b   :  { %v3349_v36 = vpop.f32.mrf.mxu3 }
 0x50c   :  { %v3326_v43 = vadd.f32 %v3325_v42, %v3302_v29  ;;  %v3862_v42 = vld [vmem:[%s4706_s10] ss:$0 sm:$0xff]  ;;  %s4111_s10 = smov [#allocation14]  }
 0x50d   :  { %s3818_s18 = sshll.u32 %s4111_s10, 4  ;;  %s3819_s18 = int_to_ptr.vmem [resolvable:$true] %s3818_s18 }
 0x50e   :  { %v3350_v50 = vadd.f32 %v3349_v36, %v3326_v43 }
 0x511   :  { %v3373_v51 = vpop.f32.mrf.mxu0 }
 0x512   :  { %v3374_v54 = vadd.f32 %v3373_v51, %v3350_v50  ;;  %v3501_v1 = vpop.f32.mrf.mxu1 }
 0x513   :  { %v3453_v57 = vpop.f32.mrf.mxu3 }
 0x514   :  { %v3396_v56 = vadd.f32 %v3395_v55, %v3374_v54 }
 0x516   :  { %3568 = vrot.lane.b32.xlu2 %v3396_v56, %s4110_s16 }
 0x519   :  { %v3477_v62 = vpop.f32.mrf.mxu0 }
 0x51b   :  { %v3427_v59 = vpop.f32.mrf.mxu2  ;;  %v3547_v7 = vpop.f32.mrf.mxu3 }
 0x51c   :  { %v3454_v60 = vadd.f32 %v3453_v57, %v3427_v59 }
 0x51e   :  { %v3478_v0 = vadd.f32 %v3477_v62, %v3454_v60 }
 0x520   :  { %v3502_v3 = vadd.f32 %v3501_v1, %v3478_v0 }
 0x523   :  { %v3525_v33 = vpop.f32.mrf.mxu2 }
 0x524   :  { %v3526_v6 = vadd.f32 %v3525_v33, %v3502_v3 }
 0x526   :  { %v3548_v31 = vadd.f32 %v3547_v7, %v3526_v6 }
 0x528   :  { %3570 = vrot.lane.b32.xlu2 %v3548_v31, %s4110_s16 }
 0x570   :  { %v3569_v22 = vpop.permute.xlu2 %3568 }
 0x571   :  { %v3580_v23 = vsel %vm3579_vm7, %v3577_v21, %v3569_v22 }
 0x572   :  { %v3591_v18 = vsel %vm162_vm0, %v3580_v23, 0 }
 0x573   :  { %v3616_v24 = vand.u32 4294901760, %v3591_v18 }
 0x575   :  { %v3617_v25 = vsub.f32 %v3591_v18, %v3616_v24  ;;  %3670 = vmatmul.f32.vlgmr.msra.gmra.mxu1 %v3616_v24 }
 0x577   :  { %v3618_v27 = vand.u32 4294901760, %v3617_v25  ;;  %3704 = vmatmul.f32.vlgmr.msra.gmra.mxu2 %v3617_v25 }
 0x579   :  { %v3619_v30 = vsub.f32 %v3617_v25, %v3618_v27  ;;  %3736 = vmatmul.f32.vlgmr.msra.gmra.mxu3 %v3618_v27 }
 0x57b   :  { %v3620_v35 = vand.u32 4294901760, %v3619_v30 }
 0x57d   :  { %3621 = vmatmul.f32.vlgmr.msra.gmra.mxu0 %v3620_v35 }
 0x582   :  { %v3571_v13 = vpop.permute.xlu2 %3570 }
 0x583   :  { %v3581_v34 = vsel %vm3579_vm7, %v3578_v37, %v3571_v13 }
 0x584   :  { %v3594_v39 = vsel %vm162_vm0, %v3581_v34, 0 }
 0x585   :  { %v3624_v40 = vand.u32 4294901760, %v3594_v39 }
 0x587   :  { %v3625_v41 = vsub.f32 %v3594_v39, %v3624_v40  ;;  %3674 = vmatmul.f32.gmra.mxu1 %v3624_v40 }
 0x589   :  { %3709 = vmatmul.f32.gmra.mxu2 %v3625_v41  ;;  %v3626_v26 = vand.u32 4294901760, %v3625_v41 }
 0x58b   :  { %3742 = vmatmul.f32.gmra.mxu3 %v3626_v26  ;;  %v3627_v38 = vsub.f32 %v3625_v41, %v3626_v26 }
 0x58d   :  { %v3628_v29 = vand.u32 4294901760, %v3627_v38 }
 0x58f   :  { %3629 = vmatmul.f32.gmra.mxu0 %v3628_v29  ;;  %3804 = vmatmul.f32.vlgmr.msrb.gmra.mxu1 %v3616_v24 }
 0x597   :  { %3775 = vmatmul.f32.vlgmr.msrb.gmra.mxu0 %v3616_v24  ;;  %3808 = vmatmul.f32.gmra.mxu1 %v3624_v40 }
 0x59f   :  { %3779 = vmatmul.f32.gmra.mxu0 %v3624_v40 }
 0x5f2   :  { %v3671_v61 = vpop.f32.mrf.mxu1 }
 0x5fa   :  { %v3622_v32 = vpop.f32.mrf.mxu0  ;;  %v3705_v36 = vpop.f32.mrf.mxu2 }
 0x5fb   :  { %v3623_v44 = vadd.f32 %v3862_v42, %v3622_v32 }
 0x5fc   :  { %v3737_v50 = vpop.f32.mrf.mxu3 }
 0x5fd   :  { %v3672_v45 = vadd.f32 %v3671_v61, %v3623_v44 }
 0x5ff   :  { %v3706_v47 = vadd.f32 %v3705_v36, %v3672_v45 }
 0x601   :  { %v3738_v51 = vadd.f32 %v3737_v50, %v3706_v47 }
 0x604   :  { %v3675_v43 = vpop.f32.mrf.mxu1 }
 0x60c   :  { %v3630_v46 = vpop.f32.mrf.mxu0  ;;  %v3805_v53 = vpop.f32.mrf.mxu1 }
 0x60d   :  { %v3631_v49 = vadd.f32 %v3862_v42, %v3630_v46  ;;  %v3710_v56 = vpop.f32.mrf.mxu2 }
 0x60e   :  { %v3743_v60 = vpop.f32.mrf.mxu3 }
 0x60f   :  { %v3676_v52 = vadd.f32 %v3675_v43, %v3631_v49 }
 0x611   :  { %v3711_v57 = vadd.f32 %v3710_v56, %v3676_v52 }
 0x613   :  { %v3744_v62 = vadd.f32 %v3743_v60, %v3711_v57 }
 0x614   :  { %v3776_v54 = vpop.f32.mrf.mxu0  ;;  %v3809_v3 = vpop.f32.mrf.mxu1 }
 0x615   :  { %v3777_v55 = vadd.f32 %v3776_v54, %v3738_v51 }
 0x617   :  { %v3806_v59 = vadd.f32 %v3805_v53, %v3777_v55 }
 0x619   :  { %3812 = vst.msk [vmem:[#allocation14] sm:$0xff] %vm162_vm0, %v3806_v59 }
 0x61c   :  { %v3780_v0 = vpop.f32.mrf.mxu0 }
 0x61d   :  { %v3781_v1 = vadd.f32 %v3780_v0, %v3744_v62 }
 0x61f   :  { %v3810_v33 = vadd.f32 %v3809_v3, %v3781_v1 }
 0x621   :  { %3813 = vst.msk [vmem:[#allocation14 + $0x8] sm:$0xff] %vm162_vm0, %v3810_v33 }
 0x622   :  { %3826 = dma.vmem_to_hbm [thread:$0]  %s3819_s18, 256, %s3821_s20, [#allocation4], %s4098_s25, %s4098_s25, %s4099_s26  }
 0x623   :  { %4095 = dma.done.wait [#allocation4], 256  }
 0x624   :  { %4096 = vsyncadd [#allocation4], 4294967040 }
 0x625   :  { %3831 = vsyncpa [#allocation3], 1 }
 0x626   :  { %3832 = vsyncpa [#allocation6], 1 }
 0x627   :  { %3833 = vsyncpa [#allocation9], 1 }
 0x628   :  { %3834 = vsyncpa [#allocation12], 1 }
 0x629   :  { %3835 = vsyncpa [#allocation4], 1 }

</bundles_post_ra>
